<compile_context>
chip_gen: v5e
topology: v5e:2x2
jax: 0.10.0
libtpu: 0.0.40
codegen_flags: <defaults>
</compile_context>

<pallas_src>
import functools
import numpy as np

import jax
import jax.numpy as jnp
from jax.experimental import pallas as pl
from jax.experimental.pallas import tpu as pltpu


# ---------------------------------------------------------------------------
# Fused Pallas kernel: all GIN layers + virtual-node MLPs
# ---------------------------------------------------------------------------
def gnn_fused_kernel(x_ref, src_ref, dstT_ref, eattr_ref, batch_ref, eps_ref,
                     w1_ref, b1_ref, w2_ref, b2_ref,
                     qw1_ref, qb1_ref, qw2_ref, qb2_ref,
                     out_ref, vnode_ref,
                     *, num_layer, num_graphs, use_take):
    f32 = jnp.float32
    lidx = pl.program_id(0)
    D = x_ref.shape[1]
    GP = vnode_ref.shape[0]

    # ---- layer-0 init: node state lives in the resident output block, vnode in scratch ----
    @pl.when(lidx == 0)
    def _init():
        out_ref[...] = x_ref[...]                      # h_{-1} := x
        vnode_ref[...] = jnp.zeros_like(vnode_ref)     # Embedding(1, D) initialized to 0

    h_prev = out_ref[...]                              # [N, D] previous layer output (or x)
    batch_col = batch_ref[...]                         # [N, 1] int32 graph id per node
    vnode_old = vnode_ref[...]                         # [GP, D]

    # ---- h_in = h_prev + virtualnode_embedding[batch]  (masked VPU broadcast, no MXU) ----
    vn_b = jnp.zeros_like(h_prev)
    for g in range(num_graphs):                        # num_graphs is small and static
        vrow = vnode_ref[g:g + 1, :]                   # [1, D]
        vn_b = vn_b + jnp.where(batch_col == g, vrow, 0.0)
    h_in = h_prev + vn_b

    # ---- GINConv message passing: msg_e = relu(h_in[src_e] + edge_attr_e); scatter-add dst ----
    if use_take:
        x_j = jnp.take(h_in, src_ref[...], axis=0)     # [E, D] index gather (no E*N*D matmul)
    else:
        x_j = jnp.dot(src_ref[...].astype(f32), h_in,  # exact bf16 one-hot fallback
                      preferred_element_type=f32)
    msg = jnp.maximum(x_j + eattr_ref[...], 0.0)
    agg = jnp.dot(dstT_ref[...].astype(f32), msg,      # scatter-add by destination node
                  preferred_element_type=f32)

    one_plus_eps = eps_ref[lidx, 0]                    # (1 + eps), eps param init = 0
    z = one_plus_eps * h_in + agg

    # ---- GIN MLP (BN folded into w1/b1) + node-level BN folded into w2/b2 ----
    h1 = jnp.maximum(jnp.dot(z, w1_ref[0], preferred_element_type=f32) + b1_ref[0], 0.0)
    h2 = jnp.dot(h1, w2_ref[0], preferred_element_type=f32) + b2_ref[0]
    h = jnp.where(lidx < num_layer - 1, jnp.maximum(h2, 0.0), h2)   # ReLU on all but last layer
    out_ref[...] = h                                   # dropout = identity (eval)

    # ---- virtual-node update (applied for all but the last layer; last uses zero-padded
    #      dummy weights and the result is discarded by the jnp.where below) ----
    # global_add_pool(h_in, batch): masked segment-sum (no [G,N] matmul), G padded to 8 rows.
    row_iota = jax.lax.broadcasted_iota(jnp.int32, (GP, D), 0)
    pool = jnp.zeros((GP, D), f32)
    for g in range(num_graphs):
        s = jnp.sum(jnp.where(batch_col == g, h_in, 0.0), axis=0, keepdims=True)   # [1, D]
        pool = jnp.where(row_iota == g, s, pool)
    t = pool + vnode_old
    v1 = jnp.maximum(jnp.dot(t, qw1_ref[0], preferred_element_type=f32) + qb1_ref[0], 0.0)
    v2 = jnp.maximum(jnp.dot(v1, qw2_ref[0], preferred_element_type=f32) + qb2_ref[0], 0.0)
    vnode_ref[...] = jnp.where(lidx < num_layer - 1, v2, vnode_old)


# ---------------------------------------------------------------------------
# Host-side parameter prep: fold BN eval affines into the Linears and stack per layer
# ---------------------------------------------------------------------------
def _fold_linear_bn(w, b, s, t):
    # y = (x @ w + b) * s + t  ==  x @ (w*s) + (b*s + t)
    return w * s, b * s + t


def _prep_stacked_params(conv_params, vnode_params):
    W1, B1, W2, B2 = [], [], [], []
    for p in conv_params:
        w1, b1 = _fold_linear_bn(p["w1"], p["b1"], p["s1"], p["t1"])
        w2, b2 = _fold_linear_bn(p["w2"], p["b2"], p["sn"], p["tn"])
        W1.append(w1); B1.append(b1); W2.append(w2); B2.append(b2)
    QW1, QB1, QW2, QB2 = [], [], [], []
    for q in vnode_params:
        w1, b1 = _fold_linear_bn(q["w1"], q["b1"], q["s1"], q["t1"])
        w2, b2 = _fold_linear_bn(q["w2"], q["b2"], q["s2"], q["t2"])
        QW1.append(w1); QB1.append(b1); QW2.append(w2); QB2.append(b2)
    # pad the virtual-node stacks to num_layer entries (last layer has no vnode MLP)
    QW1.append(jnp.zeros_like(W1[0])); QB1.append(jnp.zeros_like(B1[0]))
    QW2.append(jnp.zeros_like(W2[0])); QB2.append(jnp.zeros_like(B2[0]))
    stack = lambda xs: jnp.stack(xs, axis=0)
    return (stack(W1), stack(B1), stack(W2), stack(B2),
            stack(QW1), stack(QB1), stack(QW2), stack(QB2))


# ---------------------------------------------------------------------------
# pallas_call wrapper
# ---------------------------------------------------------------------------
def gnn_node_forward_pallas(x, src, dst, edge_attr, batch, conv_params, vnode_params,
                            num_graphs, use_take=True):
    N, D = x.shape
    E = src.shape[0]
    L = len(conv_params)
    GP = max(8, ((num_graphs + 7) // 8) * 8)           # pad graph rows to a sublane multiple

    W1, B1, W2, B2, QW1, QB1, QW2, QB2 = _prep_stacked_params(conv_params, vnode_params)

    # graph-structure operands: built once, resident in VMEM across all layers
    dst_ohT = jax.nn.one_hot(dst, N, dtype=jnp.bfloat16).T        # [N, E] exact 0/1 scatter-add op
    batch_col = batch.astype(jnp.int32).reshape(N, 1)             # [N, 1]
    one_plus_eps = jnp.ones((L, 1), jnp.float32)                  # (1 + eps), eps init = 0

    if use_take:
        src_op = src.astype(jnp.int32)                            # [E] gather indices
        src_spec = pl.BlockSpec((E,), lambda l: (0,))
    else:
        src_op = jax.nn.one_hot(src, N, dtype=jnp.bfloat16)       # [E, N] exact one-hot gather
        src_spec = pl.BlockSpec((E, N), lambda l: (0, 0))

    def fullspec(shape):                                          # resident across layers
        return pl.BlockSpec(shape, lambda l: (0,) * len(shape))

    def layerspec(shape):                                         # stacked per-layer params
        return pl.BlockSpec((1,) + shape[1:], lambda l: (l,) + (0,) * (len(shape) - 1))

    kernel = functools.partial(gnn_fused_kernel, num_layer=L, num_graphs=num_graphs,
                               use_take=use_take)

    grid_spec = pltpu.PrefetchScalarGridSpec(
        num_scalar_prefetch=0,
        grid=(L,),
        in_specs=[
            fullspec((N, D)),                                     # x
            src_spec,                                             # src gather indices / one-hot
            fullspec((N, E)),                                     # dst scatter operator (bf16)
            fullspec((E, D)),                                     # edge_attr
            fullspec((N, 1)),                                     # batch ids
            pl.BlockSpec(memory_space=pltpu.MemorySpace.SMEM),    # (1 + eps) per layer
            layerspec(W1.shape), layerspec(B1.shape), layerspec(W2.shape), layerspec(B2.shape),
            layerspec(QW1.shape), layerspec(QB1.shape), layerspec(QW2.shape), layerspec(QB2.shape),
        ],
        out_specs=fullspec((N, D)),
        scratch_shapes=[pltpu.VMEM((GP, D), jnp.float32)],        # virtual-node state
    )

    return pl.pallas_call(
        kernel,
        grid_spec=grid_spec,
        out_shape=jax.ShapeDtypeStruct((N, D), jnp.float32),
        compiler_params=pltpu.CompilerParams(
            dimension_semantics=("arbitrary",),                   # layers are sequentially dependent
        ),
    )(x, src_op, dst_ohT, edge_attr, batch_col, one_plus_eps,
      W1, B1, W2, B2, QW1, QB1, QW2, QB2)


# ---------------------------------------------------------------------------
# Pure-JAX reference (PyTorch semantics, unfolded BN)
# ---------------------------------------------------------------------------
def gnn_node_forward_ref(x, src, dst, edge_embedding, batch, conv_params,
                         vnode_params, num_graphs):
    num_layer = len(conv_params)
    D = x.shape[1]
    vnode = jnp.zeros((num_graphs, D), jnp.float32)
    h = x
    for layer in range(num_layer):
        p = conv_params[layer]
        h_in = h + vnode[batch]
        msg = jax.nn.relu(h_in[src] + edge_embedding)
        agg = jnp.zeros_like(h_in).at[dst].add(msg)
        z = 1.0 * h_in + agg
        h1 = jax.nn.relu((z @ p["w1"] + p["b1"]) * p["s1"] + p["t1"])
        hn = (h1 @ p["w2"] + p["b2"]) * p["sn"] + p["tn"]
        if layer < num_layer - 1:
            hn = jax.nn.relu(hn)
            q = vnode_params[layer]
            pool = jnp.zeros((num_graphs, D), jnp.float32).at[batch].add(h_in)
            t = pool + vnode
            v1 = jax.nn.relu((t @ q["w1"] + q["b1"]) * q["s1"] + q["t1"])
            vnode = jax.nn.relu((v1 @ q["w2"] + q["b2"]) * q["s2"] + q["t2"])
        h = hn
    return h                                                       # JK == 'last'


# ---------------------------------------------------------------------------
# Deterministic parameter init
# ---------------------------------------------------------------------------
def _linear(key, din, dout):
    k1, k2 = jax.random.split(key)
    lim = 1.0 / np.sqrt(din)
    w = jax.random.uniform(k1, (din, dout), jnp.float32, -lim, lim)
    b = jax.random.uniform(k2, (1, dout), jnp.float32, -lim, lim)
    return w, b


def _bn_affine(dim, eps=1e-5):
    # fresh BatchNorm1d in eval mode: gamma=1, beta=0, running_mean=0, running_var=1
    scale = jnp.full((1, dim), 1.0 / np.sqrt(1.0 + eps), jnp.float32)
    shift = jnp.zeros((1, dim), jnp.float32)
    return scale, shift


def make_params(key, num_layer, D):
    conv_params, vnode_params = [], []
    for _ in range(num_layer):
        key, k1, k2 = jax.random.split(key, 3)
        w1, b1 = _linear(k1, D, 2 * D)
        s1, t1 = _bn_affine(2 * D)
        w2, b2 = _linear(k2, 2 * D, D)
        sn, tn = _bn_affine(D)
        conv_params.append(dict(w1=w1, b1=b1, s1=s1, t1=t1, w2=w2, b2=b2, sn=sn, tn=tn))
    for _ in range(num_layer - 1):
        key, k1, k2 = jax.random.split(key, 3)
        w1, b1 = _linear(k1, D, 2 * D)
        s1, t1 = _bn_affine(2 * D)
        w2, b2 = _linear(k2, 2 * D, D)
        s2, t2 = _bn_affine(D)
        vnode_params.append(dict(w1=w1, b1=b1, s1=s1, t1=t1, w2=w2, b2=b2, s2=s2, t2=t2))
    return conv_params, vnode_params


# ---------------------------------------------------------------------------
# main
# ---------------------------------------------------------------------------
if __name__ == "__main__":
    NUM_LAYER = 2          # minimum allowed by GNN_node
    D = 128                # emb_dim
    G = 4                  # number of graphs in the batch
    NODES_PER_G = 16
    EDGES_PER_G = 32
    N = G * NODES_PER_G    # total nodes
    E = G * EDGES_PER_G    # total edges

    root = jax.random.PRNGKey(0)
    kx, ke, ks, kd, kp = jax.random.split(root, 5)

    x = jax.random.normal(kx, (N, D), jnp.float32)
    edge_embedding = jax.random.normal(ke, (E, D), jnp.float32)
    batch = jnp.repeat(jnp.arange(G, dtype=jnp.int32), NODES_PER_G)

    offs = (jnp.arange(G, dtype=jnp.int32) * NODES_PER_G)[:, None]
    src = (jax.random.randint(ks, (G, EDGES_PER_G), 0, NODES_PER_G) + offs).reshape(-1).astype(jnp.int32)
    dst = (jax.random.randint(kd, (G, EDGES_PER_G), 0, NODES_PER_G) + offs).reshape(-1).astype(jnp.int32)
    edge_index = jnp.stack([src, dst], axis=0)      # [2, E], PyTorch convention

    conv_params, vnode_params = make_params(kp, NUM_LAYER, D)

    ref = gnn_node_forward_ref(edge_index=None, x=x, src=edge_index[0], dst=edge_index[1],
                               edge_embedding=edge_embedding, batch=batch,
                               conv_params=conv_params, vnode_params=vnode_params,
                               num_graphs=G) if False else gnn_node_forward_ref(
        x, edge_index[0], edge_index[1], edge_embedding, batch, conv_params, vnode_params, G)
    ref = jax.block_until_ready(ref)

    def run(use_take):
        out = gnn_node_forward_pallas(x, edge_index[0], edge_index[1], edge_embedding,
                                      batch, conv_params, vnode_params, G, use_take=use_take)
        out = jax.block_until_ready(out)
        assert out.shape == (N, D) and out.dtype == jnp.float32
        np.testing.assert_allclose(np.asarray(out), np.asarray(ref), rtol=5e-2, atol=5e-2)
        return out

    try:
        out = run(use_take=True)        # preferred: in-kernel index gather for h_in[src]
    except Exception:
        # Fallback: exact bf16 one-hot gather if this Mosaic build can't lower the row gather.
        out = run(use_take=False)

    print("KERNEL_OK")
</pallas_src>

<mosaic_0001>
module attributes {stable_mosaic.version = 11 : i64} {
  func.func @gnn_fused_kernel(%arg0: i32, %arg1: memref<64x128xf32, #tpu.memory_space<vmem>>, %arg2: memref<128x64xbf16, #tpu.memory_space<vmem>>, %arg3: memref<64x128xbf16, #tpu.memory_space<vmem>>, %arg4: memref<128x128xf32, #tpu.memory_space<vmem>>, %arg5: memref<64x1xi32, #tpu.memory_space<vmem>>, %arg6: memref<2x1xf32, #tpu.memory_space<smem>>, %arg7: memref<1x128x256xf32, #tpu.memory_space<vmem>>, %arg8: memref<1x1x256xf32, #tpu.memory_space<vmem>>, %arg9: memref<1x256x128xf32, #tpu.memory_space<vmem>>, %arg10: memref<1x1x128xf32, #tpu.memory_space<vmem>>, %arg11: memref<1x128x256xf32, #tpu.memory_space<vmem>>, %arg12: memref<1x1x256xf32, #tpu.memory_space<vmem>>, %arg13: memref<1x256x128xf32, #tpu.memory_space<vmem>>, %arg14: memref<1x1x128xf32, #tpu.memory_space<vmem>>, %arg15: memref<64x128xf32, #tpu.memory_space<vmem>>, %arg16: memref<8x128xf32, #tpu.memory_space<vmem>>) attributes {dimension_semantics = [#tpu.dimension_semantics<arbitrary>], iteration_bounds = array<i64: 2>, scalar_prefetch = 0 : i64, scratch_operands = 1 : i64, tpu.core_type = #tpu.core_type<tc>, window_params = [{pipeline_mode = #tpu.pipeline_mode<synchronous>, transform_indices = @transform_0, window_bounds = array<i64: 64, 128>}, {pipeline_mode = #tpu.pipeline_mode<synchronous>, transform_indices = @transform_1, window_bounds = array<i64: 128, 64>}, {pipeline_mode = #tpu.pipeline_mode<synchronous>, transform_indices = @transform_2, window_bounds = array<i64: 64, 128>}, {pipeline_mode = #tpu.pipeline_mode<synchronous>, transform_indices = @transform_3, window_bounds = array<i64: 128, 128>}, {pipeline_mode = #tpu.pipeline_mode<synchronous>, transform_indices = @transform_4, window_bounds = array<i64: 64, 1>}, {transform_indices = @transform_5, window_bounds = array<i64: 2, 1>}, {transform_indices = @transform_6, window_bounds = array<i64: 1, 128, 256>}, {transform_indices = @transform_7, window_bounds = array<i64: 1, 1, 256>}, {transform_indices = @transform_8, window_bounds = array<i64: 1, 256, 128>}, {transform_indices = @transform_9, window_bounds = array<i64: 1, 1, 128>}, {transform_indices = @transform_10, window_bounds = array<i64: 1, 128, 256>}, {transform_indices = @transform_11, window_bounds = array<i64: 1, 1, 256>}, {transform_indices = @transform_12, window_bounds = array<i64: 1, 256, 128>}, {transform_indices = @transform_13, window_bounds = array<i64: 1, 1, 128>}, {pipeline_mode = #tpu.pipeline_mode<synchronous>, transform_indices = @transform_14, window_bounds = array<i64: 64, 128>}]} {
    %c0_i32 = arith.constant 0 : i32
    %0 = arith.cmpi eq, %arg0, %c0_i32 : i32
    %1 = arith.extui %0 : i1 to i32
    %c0_i32_0 = arith.constant 0 : i32
    %2 = arith.cmpi ne, %1, %c0_i32_0 : i32
    scf.if %2 {
      %c0_81 = arith.constant 0 : index
      %c0_82 = arith.constant 0 : index
      %160 = vector.load %arg1[%c0_81, %c0_82] : memref<64x128xf32, #tpu.memory_space<vmem>>, vector<64x128xf32>
      %c0_83 = arith.constant 0 : index
      %c0_84 = arith.constant 0 : index
      %161 = vector.load %arg15[%c0_83, %c0_84] : memref<64x128xf32, #tpu.memory_space<vmem>>, vector<64x128xf32>
      tpu.vector_store %arg15[%c0_83, %c0_84], %160 {strides = array<i32>} : memref<64x128xf32, #tpu.memory_space<vmem>>, vector<64x128xf32>,
      %cst_85 = arith.constant 0.000000e+00 : f32
      %162 = vector.broadcast %cst_85 : f32 to vector<8x128xf32>
      %c0_86 = arith.constant 0 : index
      %c0_87 = arith.constant 0 : index
      %163 = vector.load %arg16[%c0_86, %c0_87] : memref<8x128xf32, #tpu.memory_space<vmem>>, vector<8x128xf32>
      tpu.vector_store %arg16[%c0_86, %c0_87], %162 {strides = array<i32>} : memref<8x128xf32, #tpu.memory_space<vmem>>, vector<8x128xf32>,
    } else {
    }
    %c0 = arith.constant 0 : index
    %c0_1 = arith.constant 0 : index
    %3 = vector.load %arg15[%c0, %c0_1] : memref<64x128xf32, #tpu.memory_space<vmem>>, vector<64x128xf32>
    %c0_2 = arith.constant 0 : index
    %c0_3 = arith.constant 0 : index
    %4 = vector.load %arg5[%c0_2, %c0_3] : memref<64x1xi32, #tpu.memory_space<vmem>>, vector<64x1xi32>
    %c0_4 = arith.constant 0 : index
    %c0_5 = arith.constant 0 : index
    %5 = vector.load %arg16[%c0_4, %c0_5] : memref<8x128xf32, #tpu.memory_space<vmem>>, vector<8x128xf32>
    %cst = arith.constant 0.000000e+00 : f32
    %6 = vector.broadcast %cst : f32 to vector<64x128xf32>
    %c0_6 = arith.constant 0 : index
    %c0_7 = arith.constant 0 : index
    %7 = vector.load %arg16[%c0_6, %c0_7] : memref<8x128xf32, #tpu.memory_space<vmem>>, vector<1x128xf32>
    %c0_i32_8 = arith.constant 0 : i32
    %8 = vector.broadcast %c0_i32_8 : i32 to vector<64x1xi32>
    %9 = arith.cmpi eq, %4, %8 : vector<64x1xi32>
    %cst_9 = arith.constant 0.000000e+00 : f32
    %10 = vector.shape_cast %9 : vector<64x1xi1> to vector<64x1xi1>
    %11 = vector.broadcast %10 : vector<64x1xi1> to vector<64x128xi1>
    %12 = vector.shape_cast %7 : vector<1x128xf32> to vector<1x128xf32>
    %13 = vector.broadcast %12 : vector<1x128xf32> to vector<64x128xf32>
    %14 = vector.broadcast %cst_9 : f32 to vector<64x128xf32>
    %15 = arith.select %11, %13, %14 : vector<64x128xi1>, vector<64x128xf32>
    %16 = arith.addf %6, %15 : vector<64x128xf32>
    %c1 = arith.constant 1 : index
    %c0_10 = arith.constant 0 : index
    %17 = vector.load %arg16[%c1, %c0_10] : memref<8x128xf32, #tpu.memory_space<vmem>>, vector<1x128xf32>
    %c1_i32 = arith.constant 1 : i32
    %18 = vector.broadcast %c1_i32 : i32 to vector<64x1xi32>
    %19 = arith.cmpi eq, %4, %18 : vector<64x1xi32>
    %cst_11 = arith.constant 0.000000e+00 : f32
    %20 = vector.shape_cast %19 : vector<64x1xi1> to vector<64x1xi1>
    %21 = vector.broadcast %20 : vector<64x1xi1> to vector<64x128xi1>
    %22 = vector.shape_cast %17 : vector<1x128xf32> to vector<1x128xf32>
    %23 = vector.broadcast %22 : vector<1x128xf32> to vector<64x128xf32>
    %24 = vector.broadcast %cst_11 : f32 to vector<64x128xf32>
    %25 = arith.select %21, %23, %24 : vector<64x128xi1>, vector<64x128xf32>
    %26 = arith.addf %16, %25 : vector<64x128xf32>
    %c2 = arith.constant 2 : index
    %c0_12 = arith.constant 0 : index
    %27 = vector.load %arg16[%c2, %c0_12] : memref<8x128xf32, #tpu.memory_space<vmem>>, vector<1x128xf32>
    %c2_i32 = arith.constant 2 : i32
    %28 = vector.broadcast %c2_i32 : i32 to vector<64x1xi32>
    %29 = arith.cmpi eq, %4, %28 : vector<64x1xi32>
    %cst_13 = arith.constant 0.000000e+00 : f32
    %30 = vector.shape_cast %29 : vector<64x1xi1> to vector<64x1xi1>
    %31 = vector.broadcast %30 : vector<64x1xi1> to vector<64x128xi1>
    %32 = vector.shape_cast %27 : vector<1x128xf32> to vector<1x128xf32>
    %33 = vector.broadcast %32 : vector<1x128xf32> to vector<64x128xf32>
    %34 = vector.broadcast %cst_13 : f32 to vector<64x128xf32>
    %35 = arith.select %31, %33, %34 : vector<64x128xi1>, vector<64x128xf32>
    %36 = arith.addf %26, %35 : vector<64x128xf32>
    %c3 = arith.constant 3 : index
    %c0_14 = arith.constant 0 : index
    %37 = vector.load %arg16[%c3, %c0_14] : memref<8x128xf32, #tpu.memory_space<vmem>>, vector<1x128xf32>
    %c3_i32 = arith.constant 3 : i32
    %38 = vector.broadcast %c3_i32 : i32 to vector<64x1xi32>
    %39 = arith.cmpi eq, %4, %38 : vector<64x1xi32>
    %cst_15 = arith.constant 0.000000e+00 : f32
    %40 = vector.shape_cast %39 : vector<64x1xi1> to vector<64x1xi1>
    %41 = vector.broadcast %40 : vector<64x1xi1> to vector<64x128xi1>
    %42 = vector.shape_cast %37 : vector<1x128xf32> to vector<1x128xf32>
    %43 = vector.broadcast %42 : vector<1x128xf32> to vector<64x128xf32>
    %44 = vector.broadcast %cst_15 : f32 to vector<64x128xf32>
    %45 = arith.select %41, %43, %44 : vector<64x128xi1>, vector<64x128xf32>
    %46 = arith.addf %36, %45 : vector<64x128xf32>
    %47 = arith.addf %3, %46 : vector<64x128xf32>
    %c0_16 = arith.constant 0 : index
    %c0_17 = arith.constant 0 : index
    %48 = vector.load %arg2[%c0_16, %c0_17] : memref<128x64xbf16, #tpu.memory_space<vmem>>, vector<128x64xbf16>
    %49 = arith.extf %48 : vector<128x64xbf16> to vector<128x64xf32>
    %cst_18 = arith.constant dense<0.000000e+00> : vector<128x128xf32>
    %50 = tpu.matmul %49, %47, %cst_18 {dimension_numbers = #tpu.dot_dimension_numbers<[1], [0], [0], [1], [0, 0, 1, 1], [], []>} : vector<128x64xf32>, vector<64x128xf32>, vector<128x128xf32> -> vector<128x128xf32>
    %c0_19 = arith.constant 0 : index
    %c0_20 = arith.constant 0 : index
    %51 = vector.load %arg4[%c0_19, %c0_20] : memref<128x128xf32, #tpu.memory_space<vmem>>, vector<128x128xf32>
    %52 = arith.addf %50, %51 : vector<128x128xf32>
    %cst_21 = arith.constant 0.000000e+00 : f32
    %53 = vector.broadcast %cst_21 : f32 to vector<128x128xf32>
    %54 = arith.maximumf %52, %53 : vector<128x128xf32>
    %c0_22 = arith.constant 0 : index
    %c0_23 = arith.constant 0 : index
    %55 = vector.load %arg3[%c0_22, %c0_23] : memref<64x128xbf16, #tpu.memory_space<vmem>>, vector<64x128xbf16>
    %56 = arith.extf %55 : vector<64x128xbf16> to vector<64x128xf32>
    %cst_24 = arith.constant dense<0.000000e+00> : vector<64x128xf32>
    %57 = tpu.matmul %56, %54, %cst_24 {dimension_numbers = #tpu.dot_dimension_numbers<[1], [0], [0], [1], [0, 0, 1, 1], [], []>} : vector<64x128xf32>, vector<128x128xf32>, vector<64x128xf32> -> vector<64x128xf32>
    %58 = arith.index_cast %arg0 : i32 to index
    %c0_25 = arith.constant 0 : index
    %59 = memref.load %arg6[%58, %c0_25] : memref<2x1xf32, #tpu.memory_space<smem>>
    %60 = vector.broadcast %59 : f32 to vector<64x128xf32>
    %61 = arith.mulf %60, %47 : vector<64x128xf32>
    %62 = arith.addf %61, %57 : vector<64x128xf32>
    %c0_26 = arith.constant 0 : index
    %c0_27 = arith.constant 0 : index
    %c0_28 = arith.constant 0 : index
    %63 = vector.load %arg7[%c0_26, %c0_27, %c0_28] : memref<1x128x256xf32, #tpu.memory_space<vmem>>, vector<1x128x256xf32>
    %64 = vector.shape_cast %63 : vector<1x128x256xf32> to vector<128x256xf32>
    %cst_29 = arith.constant dense<0.000000e+00> : vector<64x256xf32>
    %65 = tpu.matmul %62, %64, %cst_29 {dimension_numbers = #tpu.dot_dimension_numbers<[1], [0], [0], [1], [0, 0, 1, 1], [], []>} : vector<64x128xf32>, vector<128x256xf32>, vector<64x256xf32> -> vector<64x256xf32>
    %c0_30 = arith.constant 0 : index
    %c0_31 = arith.constant 0 : index
    %c0_32 = arith.constant 0 : index
    %66 = vector.load %arg8[%c0_30, %c0_31, %c0_32] : memref<1x1x256xf32, #tpu.memory_space<vmem>>, vector<1x1x256xf32>
    %67 = vector.shape_cast %66 : vector<1x1x256xf32> to vector<1x256xf32>
    %68 = vector.broadcast %67 : vector<1x256xf32> to vector<64x256xf32>
    %69 = arith.addf %65, %68 : vector<64x256xf32>
    %cst_33 = arith.constant 0.000000e+00 : f32
    %70 = vector.broadcast %cst_33 : f32 to vector<64x256xf32>
    %71 = arith.maximumf %69, %70 : vector<64x256xf32>
    %c0_34 = arith.constant 0 : index
    %c0_35 = arith.constant 0 : index
    %c0_36 = arith.constant 0 : index
    %72 = vector.load %arg9[%c0_34, %c0_35, %c0_36] : memref<1x256x128xf32, #tpu.memory_space<vmem>>, vector<1x256x128xf32>
    %73 = vector.shape_cast %72 : vector<1x256x128xf32> to vector<256x128xf32>
    %cst_37 = arith.constant dense<0.000000e+00> : vector<64x128xf32>
    %74 = tpu.matmul %71, %73, %cst_37 {dimension_numbers = #tpu.dot_dimension_numbers<[1], [0], [0], [1], [0, 0, 1, 1], [], []>} : vector<64x256xf32>, vector<256x128xf32>, vector<64x128xf32> -> vector<64x128xf32>
    %c0_38 = arith.constant 0 : index
    %c0_39 = arith.constant 0 : index
    %c0_40 = arith.constant 0 : index
    %75 = vector.load %arg10[%c0_38, %c0_39, %c0_40] : memref<1x1x128xf32, #tpu.memory_space<vmem>>, vector<1x1x128xf32>
    %76 = vector.shape_cast %75 : vector<1x1x128xf32> to vector<1x128xf32>
    %77 = vector.broadcast %76 : vector<1x128xf32> to vector<64x128xf32>
    %78 = arith.addf %74, %77 : vector<64x128xf32>
    %c1_i32_41 = arith.constant 1 : i32
    %79 = arith.cmpi slt, %arg0, %c1_i32_41 : i32
    %cst_42 = arith.constant 0.000000e+00 : f32
    %80 = vector.broadcast %cst_42 : f32 to vector<64x128xf32>
    %81 = arith.maximumf %78, %80 : vector<64x128xf32>
    %82 = arith.select %79, %81, %78 : vector<64x128xf32>
    %c0_43 = arith.constant 0 : index
    %c0_44 = arith.constant 0 : index
    %83 = vector.load %arg15[%c0_43, %c0_44] : memref<64x128xf32, #tpu.memory_space<vmem>>, vector<64x128xf32>
    tpu.vector_store %arg15[%c0_43, %c0_44], %82 {strides = array<i32>} : memref<64x128xf32, #tpu.memory_space<vmem>>, vector<64x128xf32>,
    %84 = tpu.iota {dimensions = array<i32: 0>} : vector<8x128xi32>
    %cst_45 = arith.constant 0.000000e+00 : f32
    %85 = vector.broadcast %cst_45 : f32 to vector<8x128xf32>
    %c0_i32_46 = arith.constant 0 : i32
    %86 = vector.broadcast %c0_i32_46 : i32 to vector<64x1xi32>
    %87 = arith.cmpi eq, %4, %86 : vector<64x1xi32>
    %cst_47 = arith.constant 0.000000e+00 : f32
    %88 = vector.shape_cast %87 : vector<64x1xi1> to vector<64x1xi1>
    %89 = vector.broadcast %88 : vector<64x1xi1> to vector<64x128xi1>
    %90 = vector.broadcast %cst_47 : f32 to vector<64x128xf32>
    %91 = arith.select %89, %47, %90 : vector<64x128xi1>, vector<64x128xf32>
    %cst_48 = arith.constant dense<0.000000e+00> : vector<128xf32>
    %92 = vector.multi_reduction <add>, %91, %cst_48 [0] : vector<64x128xf32> to vector<128xf32>
    %93 = vector.shape_cast %92 : vector<128xf32> to vector<1x128xf32>
    %c0_i32_49 = arith.constant 0 : i32
    %94 = vector.broadcast %c0_i32_49 : i32 to vector<8x128xi32>
    %95 = arith.cmpi eq, %84, %94 : vector<8x128xi32>
    %96 = vector.shape_cast %93 : vector<1x128xf32> to vector<1x128xf32>
    %97 = vector.broadcast %96 : vector<1x128xf32> to vector<8x128xf32>
    %98 = arith.select %95, %97, %85 : vector<8x128xi1>, vector<8x128xf32>
    %c1_i32_50 = arith.constant 1 : i32
    %99 = vector.broadcast %c1_i32_50 : i32 to vector<64x1xi32>
    %100 = arith.cmpi eq, %4, %99 : vector<64x1xi32>
    %cst_51 = arith.constant 0.000000e+00 : f32
    %101 = vector.shape_cast %100 : vector<64x1xi1> to vector<64x1xi1>
    %102 = vector.broadcast %101 : vector<64x1xi1> to vector<64x128xi1>
    %103 = vector.broadcast %cst_51 : f32 to vector<64x128xf32>
    %104 = arith.select %102, %47, %103 : vector<64x128xi1>, vector<64x128xf32>
    %cst_52 = arith.constant dense<0.000000e+00> : vector<128xf32>
    %105 = vector.multi_reduction <add>, %104, %cst_52 [0] : vector<64x128xf32> to vector<128xf32>
    %106 = vector.shape_cast %105 : vector<128xf32> to vector<1x128xf32>
    %c1_i32_53 = arith.constant 1 : i32
    %107 = vector.broadcast %c1_i32_53 : i32 to vector<8x128xi32>
    %108 = arith.cmpi eq, %84, %107 : vector<8x128xi32>
    %109 = vector.shape_cast %106 : vector<1x128xf32> to vector<1x128xf32>
    %110 = vector.broadcast %109 : vector<1x128xf32> to vector<8x128xf32>
    %111 = arith.select %108, %110, %98 : vector<8x128xi1>, vector<8x128xf32>
    %c2_i32_54 = arith.constant 2 : i32
    %112 = vector.broadcast %c2_i32_54 : i32 to vector<64x1xi32>
    %113 = arith.cmpi eq, %4, %112 : vector<64x1xi32>
    %cst_55 = arith.constant 0.000000e+00 : f32
    %114 = vector.shape_cast %113 : vector<64x1xi1> to vector<64x1xi1>
    %115 = vector.broadcast %114 : vector<64x1xi1> to vector<64x128xi1>
    %116 = vector.broadcast %cst_55 : f32 to vector<64x128xf32>
    %117 = arith.select %115, %47, %116 : vector<64x128xi1>, vector<64x128xf32>
    %cst_56 = arith.constant dense<0.000000e+00> : vector<128xf32>
    %118 = vector.multi_reduction <add>, %117, %cst_56 [0] : vector<64x128xf32> to vector<128xf32>
    %119 = vector.shape_cast %118 : vector<128xf32> to vector<1x128xf32>
    %c2_i32_57 = arith.constant 2 : i32
    %120 = vector.broadcast %c2_i32_57 : i32 to vector<8x128xi32>
    %121 = arith.cmpi eq, %84, %120 : vector<8x128xi32>
    %122 = vector.shape_cast %119 : vector<1x128xf32> to vector<1x128xf32>
    %123 = vector.broadcast %122 : vector<1x128xf32> to vector<8x128xf32>
    %124 = arith.select %121, %123, %111 : vector<8x128xi1>, vector<8x128xf32>
    %c3_i32_58 = arith.constant 3 : i32
    %125 = vector.broadcast %c3_i32_58 : i32 to vector<64x1xi32>
    %126 = arith.cmpi eq, %4, %125 : vector<64x1xi32>
    %cst_59 = arith.constant 0.000000e+00 : f32
    %127 = vector.shape_cast %126 : vector<64x1xi1> to vector<64x1xi1>
    %128 = vector.broadcast %127 : vector<64x1xi1> to vector<64x128xi1>
    %129 = vector.broadcast %cst_59 : f32 to vector<64x128xf32>
    %130 = arith.select %128, %47, %129 : vector<64x128xi1>, vector<64x128xf32>
    %cst_60 = arith.constant dense<0.000000e+00> : vector<128xf32>
    %131 = vector.multi_reduction <add>, %130, %cst_60 [0] : vector<64x128xf32> to vector<128xf32>
    %132 = vector.shape_cast %131 : vector<128xf32> to vector<1x128xf32>
    %c3_i32_61 = arith.constant 3 : i32
    %133 = vector.broadcast %c3_i32_61 : i32 to vector<8x128xi32>
    %134 = arith.cmpi eq, %84, %133 : vector<8x128xi32>
    %135 = vector.shape_cast %132 : vector<1x128xf32> to vector<1x128xf32>
    %136 = vector.broadcast %135 : vector<1x128xf32> to vector<8x128xf32>
    %137 = arith.select %134, %136, %124 : vector<8x128xi1>, vector<8x128xf32>
    %138 = arith.addf %137, %5 : vector<8x128xf32>
    %c0_62 = arith.constant 0 : index
    %c0_63 = arith.constant 0 : index
    %c0_64 = arith.constant 0 : index
    %139 = vector.load %arg11[%c0_62, %c0_63, %c0_64] : memref<1x128x256xf32, #tpu.memory_space<vmem>>, vector<1x128x256xf32>
    %140 = vector.shape_cast %139 : vector<1x128x256xf32> to vector<128x256xf32>
    %cst_65 = arith.constant dense<0.000000e+00> : vector<8x256xf32>
    %141 = tpu.matmul %138, %140, %cst_65 {dimension_numbers = #tpu.dot_dimension_numbers<[1], [0], [0], [1], [0, 0, 1, 1], [], []>} : vector<8x128xf32>, vector<128x256xf32>, vector<8x256xf32> -> vector<8x256xf32>
    %c0_66 = arith.constant 0 : index
    %c0_67 = arith.constant 0 : index
    %c0_68 = arith.constant 0 : index
    %142 = vector.load %arg12[%c0_66, %c0_67, %c0_68] : memref<1x1x256xf32, #tpu.memory_space<vmem>>, vector<1x1x256xf32>
    %143 = vector.shape_cast %142 : vector<1x1x256xf32> to vector<1x256xf32>
    %144 = vector.broadcast %143 : vector<1x256xf32> to vector<8x256xf32>
    %145 = arith.addf %141, %144 : vector<8x256xf32>
    %cst_69 = arith.constant 0.000000e+00 : f32
    %146 = vector.broadcast %cst_69 : f32 to vector<8x256xf32>
    %147 = arith.maximumf %145, %146 : vector<8x256xf32>
    %c0_70 = arith.constant 0 : index
    %c0_71 = arith.constant 0 : index
    %c0_72 = arith.constant 0 : index
    %148 = vector.load %arg13[%c0_70, %c0_71, %c0_72] : memref<1x256x128xf32, #tpu.memory_space<vmem>>, vector<1x256x128xf32>
    %149 = vector.shape_cast %148 : vector<1x256x128xf32> to vector<256x128xf32>
    %cst_73 = arith.constant dense<0.000000e+00> : vector<8x128xf32>
    %150 = tpu.matmul %147, %149, %cst_73 {dimension_numbers = #tpu.dot_dimension_numbers<[1], [0], [0], [1], [0, 0, 1, 1], [], []>} : vector<8x256xf32>, vector<256x128xf32>, vector<8x128xf32> -> vector<8x128xf32>
    %c0_74 = arith.constant 0 : index
    %c0_75 = arith.constant 0 : index
    %c0_76 = arith.constant 0 : index
    %151 = vector.load %arg14[%c0_74, %c0_75, %c0_76] : memref<1x1x128xf32, #tpu.memory_space<vmem>>, vector<1x1x128xf32>
    %152 = vector.shape_cast %151 : vector<1x1x128xf32> to vector<1x128xf32>
    %153 = vector.broadcast %152 : vector<1x128xf32> to vector<8x128xf32>
    %154 = arith.addf %150, %153 : vector<8x128xf32>
    %cst_77 = arith.constant 0.000000e+00 : f32
    %155 = vector.broadcast %cst_77 : f32 to vector<8x128xf32>
    %156 = arith.maximumf %154, %155 : vector<8x128xf32>
    %c1_i32_78 = arith.constant 1 : i32
    %157 = arith.cmpi slt, %arg0, %c1_i32_78 : i32
    %158 = arith.select %157, %156, %5 : vector<8x128xf32>
    %c0_79 = arith.constant 0 : index
    %c0_80 = arith.constant 0 : index
    %159 = vector.load %arg16[%c0_79, %c0_80] : memref<8x128xf32, #tpu.memory_space<vmem>>, vector<8x128xf32>
    tpu.vector_store %arg16[%c0_79, %c0_80], %158 {strides = array<i32>} : memref<8x128xf32, #tpu.memory_space<vmem>>, vector<8x128xf32>,
    return
  }
  func.func @transform_0(%arg0: i32) -> (i32, i32) {
    %c0_i32 = arith.constant 0 : i32
    %c0_i32_0 = arith.constant 0 : i32
    %c0_i32_1 = arith.constant 0 : i32
    return %c0_i32, %c0_i32_0 : i32, i32
  }
  func.func @transform_1(%arg0: i32) -> (i32, i32) {
    %c0_i32 = arith.constant 0 : i32
    %c0_i32_0 = arith.constant 0 : i32
    %c0_i32_1 = arith.constant 0 : i32
    return %c0_i32, %c0_i32_0 : i32, i32
  }
  func.func @transform_2(%arg0: i32) -> (i32, i32) {
    %c0_i32 = arith.constant 0 : i32
    %c0_i32_0 = arith.constant 0 : i32
    %c0_i32_1 = arith.constant 0 : i32
    return %c0_i32, %c0_i32_0 : i32, i32
  }
  func.func @transform_3(%arg0: i32) -> (i32, i32) {
    %c0_i32 = arith.constant 0 : i32
    %c0_i32_0 = arith.constant 0 : i32
    %c0_i32_1 = arith.constant 0 : i32
    return %c0_i32, %c0_i32_0 : i32, i32
  }
  func.func @transform_4(%arg0: i32) -> (i32, i32) {
    %c0_i32 = arith.constant 0 : i32
    %c0_i32_0 = arith.constant 0 : i32
    %c0_i32_1 = arith.constant 0 : i32
    return %c0_i32, %c0_i32_0 : i32, i32
  }
  func.func @transform_5(%arg0: i32) -> (i32, i32) {
    %c0_i32 = arith.constant 0 : i32
    %c0_i32_0 = arith.constant 0 : i32
    %c0_i32_1 = arith.constant 0 : i32
    return %c0_i32, %c0_i32_0 : i32, i32
  }
  func.func @transform_6(%arg0: i32) -> (i32, i32, i32) {
    %c0_i32 = arith.constant 0 : i32
    %c0_i32_0 = arith.constant 0 : i32
    %c0_i32_1 = arith.constant 0 : i32
    return %arg0, %c0_i32, %c0_i32_0 : i32, i32, i32
  }
  func.func @transform_7(%arg0: i32) -> (i32, i32, i32) {
    %c0_i32 = arith.constant 0 : i32
    %c0_i32_0 = arith.constant 0 : i32
    %c0_i32_1 = arith.constant 0 : i32
    return %arg0, %c0_i32, %c0_i32_0 : i32, i32, i32
  }
  func.func @transform_8(%arg0: i32) -> (i32, i32, i32) {
    %c0_i32 = arith.constant 0 : i32
    %c0_i32_0 = arith.constant 0 : i32
    %c0_i32_1 = arith.constant 0 : i32
    return %arg0, %c0_i32, %c0_i32_0 : i32, i32, i32
  }
  func.func @transform_9(%arg0: i32) -> (i32, i32, i32) {
    %c0_i32 = arith.constant 0 : i32
    %c0_i32_0 = arith.constant 0 : i32
    %c0_i32_1 = arith.constant 0 : i32
    return %arg0, %c0_i32, %c0_i32_0 : i32, i32, i32
  }
  func.func @transform_10(%arg0: i32) -> (i32, i32, i32) {
    %c0_i32 = arith.constant 0 : i32
    %c0_i32_0 = arith.constant 0 : i32
    %c0_i32_1 = arith.constant 0 : i32
    return %arg0, %c0_i32, %c0_i32_0 : i32, i32, i32
  }
  func.func @transform_11(%arg0: i32) -> (i32, i32, i32) {
    %c0_i32 = arith.constant 0 : i32
    %c0_i32_0 = arith.constant 0 : i32
    %c0_i32_1 = arith.constant 0 : i32
    return %arg0, %c0_i32, %c0_i32_0 : i32, i32, i32
  }
  func.func @transform_12(%arg0: i32) -> (i32, i32, i32) {
    %c0_i32 = arith.constant 0 : i32
    %c0_i32_0 = arith.constant 0 : i32
    %c0_i32_1 = arith.constant 0 : i32
    return %arg0, %c0_i32, %c0_i32_0 : i32, i32, i32
  }
  func.func @transform_13(%arg0: i32) -> (i32, i32, i32) {
    %c0_i32 = arith.constant 0 : i32
    %c0_i32_0 = arith.constant 0 : i32
    %c0_i32_1 = arith.constant 0 : i32
    return %arg0, %c0_i32, %c0_i32_0 : i32, i32, i32
  }
  func.func @transform_14(%arg0: i32) -> (i32, i32) {
    %c0_i32 = arith.constant 0 : i32
    %c0_i32_0 = arith.constant 0 : i32
    %c0_i32_1 = arith.constant 0 : i32
    return %c0_i32, %c0_i32_0 : i32, i32
  }
}

</mosaic_0001>

<bundles_post_ra>
// kernel: tpu_custom_call.1
= control target key start
LH: loop header
LB: loop body
LE: loop exit
PB: predicated region body
PF: predicated region fallthrough
CT: control target
= control target key end

     0   :  { %s3401_s0 = inlined_call_operand.hbm [shape: f32[64,128], index: 0, kind: input, shape index: {}]   ;;  %s3402_s1 = inlined_call_operand.vmem [shape: bf16[128,64], index: 1, kind: input, shape index: {}]   ;;  %s3403_s2 = inlined_call_operand.vmem [shape: bf16[64,128], index: 2, kind: input, shape index: {}]   ;;  %s3404_s3 = inlined_call_operand.vmem [shape: f32[128,128], index: 3, kind: input, shape index: {}]   ;;  %s3405_s4 = inlined_call_operand.vmem [shape: s32[64,1], index: 4, kind: input, shape index: {}]   ;;  %s3406_s5 = inlined_call_operand.vmem [shape: f32[2,1], index: 5, kind: input, shape index: {}]   ;;  %s3407_s6 = inlined_call_operand.hbm [shape: f32[2,128,256], index: 6, kind: input, shape index: {}]   ;;  %s3408_s7 = inlined_call_operand.vmem [shape: f32[2,1,256], index: 7, kind: input, shape index: {}]   ;;  %s3409_s8 = inlined_call_operand.hbm [shape: f32[2,256,128], index: 8, kind: input, shape index: {}]   ;;  %s3410_s9 = inlined_call_operand.vmem [shape: f32[2,1,128], index: 9, kind: input, shape index: {}]   ;;  %s3411_s10 = inlined_call_operand.hbm [shape: f32[2,128,256], index: 10, kind: input, shape index: {}]   ;;  %s3412_s11 = inlined_call_operand.vmem [shape: f32[2,1,256], index: 11, kind: input, shape index: {}]   ;;  %s3413_s12 = inlined_call_operand.hbm [shape: f32[2,256,128], index: 12, kind: input, shape index: {}]   ;;  %s3414_s13 = inlined_call_operand.vmem [shape: f32[2,1,128], index: 13, kind: input, shape index: {}]   ;;  %s3415_s14 = inlined_call_operand.hbm [shape: f32[64,128], index: 14, kind: output, shape index: {}]  }
   0x1   :  { %3423 = sst [smem:[#allocation23_spill]] %s3401_s0 }
   0x2   :  { %3424 = sst [smem:[#allocation24_spill]] %s3402_s1 }
   0x3   :  { %3425 = sst [smem:[#allocation25_spill]] %s3403_s2 }
   0x4   :  { %3426 = sst [smem:[#allocation26_spill]] %s3404_s3 }
   0x5   :  { %3427 = sst [smem:[#allocation27_spill]] %s3407_s6 }
   0x6   :  { %3428 = sst [smem:[#allocation28_spill]] %s3411_s10 }
   0x7   :  { %3429 = sst [smem:[#allocation29_spill]] %s3415_s14 }
   0x8   :  { %19 = vsyncpa [#allocation4], 0 }
   0x9   :  { %20 = vsyncpa [#allocation6], 0 }
   0xa   :  { %21 = vsyncpa [#allocation9], 0 }
   0xb   :  { %23 = vsyncpa [#allocation9 + $0x1], 0 }
   0xc   :  { %24 = vsyncpa [#allocation12], 0 }
   0xd   :  { %26 = vsyncpa [#allocation12 + $0x1], 0 }
   0xe   :  { %27 = vsyncpa [#allocation5], 0  ;;  %s2519_s29 = smov 0   ;;  %s2521_s30 = smov 0  }
   0xf   :  { %s2523_s15 = smov 0   ;;  %s2525_s16 = smov 0  }
  0x10 LB: > { %3430 = sst [smem:[#allocation20_spill]] %s2427_s15  ;;  %s2540_s17 = sadd.s32 1, %s2431_s16   ;;  %s2431_s16 = sphi %s2525_s16, %s3446_s16   ;;  %s2427_s15 = sphi %s2523_s15, %s3448_s15   ;;  %s2423_s30 = sphi %s2521_s30, %s3450_s30   ;;  %s2419_s29 = sphi %s2519_s29, %s3449_s29  }
  0x11   : > { %3431 = sst [smem:[#allocation21_spill]] %s2540_s17  ;;  %s166_s18 = sadd.s32 1, %s2427_s15 }
  0x12   : > { %s163_s19 = ssub.s32 %s2431_s16, %s2540_s17  ;;  %p173_p0 = scmp.ne.s32.totalorder %s2427_s15, %s2423_s30 }
  0x13   : > { %p164_p1 = scmp.eq.s32.totalorder %s163_s19, 0  ;;  %p174_p2 = scmp.eq.s32.totalorder %s2431_s16, 0 }
  0x14   : > { %p2131_p3 = scmp.lt.s32.totalorder %s2431_s16, 2  ;;  %s3419_s21 = sand.u32 1, %s2431_s16  }
  0x15   : > { %s2550_s20 = scalar_select %p164_p1, %s2427_s15, %s166_s18  }
  0x16   : > { %p175_p4 = por %p174_p2, %p173_p0  ;;  %s444_s22 = sand.u32 1, %s2427_s15  }
  0x17   : > { %3432 = sst [smem:[#allocation22_spill]] %s2550_s20  ;;  %s2554_s23 = sshll.u32 %s444_s22, 8 }
  0x18   : > { %s2557_s24 = sshll.u32 %s2431_s16, 8  ;;  %s3433_s6 = sld [smem:[#allocation27_spill]] }
  0x19   : > { %s446_s19 = scalar_lea.vmem [#allocation8], %s2554_s23  ;;  %p2566_p5 = pnand %p2131_p3, %p175_p4 }
  0x1a   : > { %s454_s17 = sshll.u32 %s446_s19, 4  ;;  %s2572_s22 = scalar_lea.sflag [#allocation9], %s3419_s21  ;;  %s455_s17 = int_to_ptr.vmem [resolvable:$true] %s454_s17 }
  0x1b   : > { %p2192_p7 = pneg %p2566_p5 }
  0x1e   : > { %s451_s27 = scalar_lea.hbm %s3433_s6, %s2557_s24 }
  0x1f   : > { %s452_s28 = sshll.u32 %s451_s27, 4  ;;  %s2195_s27 = scalar_lea.hbm %s3433_s6, 512  ;;  %s453_s28 = int_to_ptr.hbm [resolvable:$true] %s452_s28 }
  0x20   : > { %s2188_s20 = sshra.s32 %s453_s28, 4  ;;  %s2189_s20 = int_to_ptr.hbm [resolvable:$true] %s2188_s20 }
  0x21   : > { %s2190_s15 = scalar_lea.hbm %s2189_s20, 256  ;;  %p2196_p10 = scmp.lt.s32.totalorder %s2189_s20, %s3433_s6 }
  0x22   : > { %p2191_p6 = scmp.ne.s32.totalorder %s2189_s20, %s2190_s15  ;;  %p2197_p11 = scmp.lt.s32.totalorder %s2195_s27, %s2190_s15 }
  0x24   : > { %p2193_p8 = pnand %p2192_p7, %p2191_p6  ;;  %p2198_p12 = por %p2197_p11, %p2196_p10 }
  0x26   : > { %p2194_p9 = pneg %p2193_p8 }
  0x28   : > { %p2199_p13 = pnand %p2198_p12, %p2194_p9 }
  0x2a   : > { %2202 = shalt.err (!%p2199_p13)
}
  0x2b   : > { %s2433_s21 = smov 256   ;;  %s2434_s2 = smov 16  }
  0x2c   : > { %2119 = dma.hbm_to_vmem [thread:$0]  (!%p2566_p5), %s453_s28, 4096, %s455_s17, %s2572_s22, %s2433_s21, %s2433_s21, %s2434_s2  }
  0x2d   : > { %s3435_s10 = sld [smem:[#allocation28_spill]]  ;;  %s503_s14 = scalar_lea.vmem [#allocation11], %s2554_s23 }
  0x2e   : > { %s511_s20 = sshll.u32 %s503_s14, 4  ;;  %s3436_s27 = sand.u32 1, %s2431_s16   ;;  %s512_s20 = int_to_ptr.vmem [resolvable:$true] %s511_s20 }
  0x2f   : > { %s2595_s19 = scalar_lea.sflag [#allocation12], %s3436_s27 }
  0x33   : > { %s508_s3 = scalar_lea.hbm %s3435_s10, %s2557_s24  ;;  %s2225_s25 = scalar_lea.hbm %s3435_s10, 512 }
  0x34   : > { %s509_s15 = sshll.u32 %s508_s3, 4  ;;  %s510_s15 = int_to_ptr.hbm [resolvable:$true] %s509_s15 }
  0x35   : > { %s2218_s6 = sshra.s32 %s510_s15, 4  ;;  %s2219_s6 = int_to_ptr.hbm [resolvable:$true] %s2218_s6 }
  0x36   : > { %s2220_s1 = scalar_lea.hbm %s2219_s6, 256  ;;  %p2226_p3 = scmp.lt.s32.totalorder %s2219_s6, %s3435_s10 }
  0x37   : > { %p2221_p0 = scmp.ne.s32.totalorder %s2219_s6, %s2220_s1  ;;  %p2227_p4 = scmp.lt.s32.totalorder %s2225_s25, %s2220_s1 }
  0x39   : > { %p2223_p1 = pnand %p2221_p0, %p2192_p7  ;;  %p2228_p6 = por %p2227_p4, %p2226_p3 }
  0x3b   : > { %p2224_p2 = pneg %p2223_p1 }
  0x3d   : > { %p2229_p8 = pnand %p2228_p6, %p2224_p2 }
  0x3f   : > { %2232 = shalt.err (!%p2229_p8)
}
  0x40   : > { %2125 = dma.hbm_to_vmem [thread:$0]  (!%p2566_p5), %s510_s15, 4096, %s512_s20, %s2595_s19, %s2433_s21, %s2433_s21, %s2434_s2  }
  0x41   : > { %s2610_s3 = sadd.s32 4294967295, %s2431_s16   ;;  %p179_p9 = scmp.ne.s32.totalorder %s2423_s30, %s2419_s29 }
  0x42   : > { %p180_p10 = scmp.eq.s32.totalorder %s2610_s3, 0  ;;  %p1980_p11 = scmp.ge.s32.totalorder %s2431_s16, 1 }
  0x43   : > { %p393_p12 = scmp.lt.s32.totalorder %s2431_s16, 3  ;;  %p1981_p0 = scmp.ne.s32.totalorder %s2610_s3, 0 }
  0x44   : > { %p2619_p13 = por %p180_p10, %p179_p9  ;;  %s3439_s0 = sld [smem:[#allocation23_spill]] }
  0x45   : > { %p2624_p1 = pnand %p1980_p11, %p393_p12  ;;  %s2435_s29 = smov [#allocation3]  }
  0x46   : > { %s406_s16 = sshll.u32 %s2435_s29, 4  ;;  %s431_s17 = sshll.u32 %s3406_s5, 4  ;;  %s407_s16 = int_to_ptr.vmem [resolvable:$true] %s406_s16  ;;  %s432_s17 = int_to_ptr.vmem [resolvable:$true] %s431_s17 }
  0x47   : > { %p2109_p2 = pneg %p2624_p1  ;;  %s2436_s28 = smov 128  }
  0x48   : > { %s2437_s25 = smov 8   ;;  %s2438_s26 = smov [#allocation7]  }
  0x49   : > { %p2110_p3 = pnand %p2109_p2, %p180_p10  ;;  %s480_s21 = scalar_lea.hbm %s3409_s8, %s2557_s24 }
  0x4a   : > { %s404_s20 = sshll.u32 %s3439_s0, 4  ;;  %s481_s29 = sshll.u32 %s480_s21, 4  ;;  %s405_s20 = int_to_ptr.hbm [resolvable:$true] %s404_s20  ;;  %s482_s29 = int_to_ptr.hbm [resolvable:$true] %s481_s29 }
  0x4b   : > { %2112 = dma.hbm_to_vmem [thread:$0]  (!%p2110_p3), %s405_s20, 1024, %s407_s16, [#allocation4], %s2436_s28, %s2436_s28, %s2437_s25  }
  0x4c   : > { %2115 = dma.vmem_to_smem (!%p2110_p3), %s432_s17, 32, %s2438_s26, [#allocation6]  }
  0x4d   : > { %s475_s0 = scalar_lea.vmem [#allocation10], %s2554_s23  ;;  %s2293_s15 = sshra.s32 %s482_s29, 4  ;;  %s2294_s15 = int_to_ptr.hbm [resolvable:$true] %s2293_s15 }
  0x4e   : > { %s483_s10 = sshll.u32 %s475_s0, 4  ;;  %s2295_s27 = scalar_lea.hbm %s2294_s15, 256  ;;  %s484_s10 = int_to_ptr.vmem [resolvable:$true] %s483_s10 }
  0x4f   : > { %p2296_p4 = scmp.ne.s32.totalorder %s2294_s15, %s2295_s27  ;;  %s2300_s17 = scalar_lea.hbm %s3409_s8, 512 }
  0x50   : > { %p2301_p9 = scmp.lt.s32.totalorder %s2294_s15, %s3409_s8  ;;  %p2302_p11 = scmp.lt.s32.totalorder %s2300_s17, %s2295_s27 }
  0x51   : > { %p2298_p6 = pnand %p2296_p4, %p2192_p7 }
  0x52   : > { %p2303_p12 = por %p2302_p11, %p2301_p9 }
  0x53   : > { %p2299_p8 = pneg %p2298_p6 }
  0x55   : > { %p2304_p2 = pnand %p2303_p12, %p2299_p8 }
  0x57   : > { %2307 = shalt.err (!%p2304_p2)
}
  0x58   : > { %2122 = dma.hbm_to_vmem [thread:$0]  (!%p2566_p5), %s482_s29, 4096, %s484_s10, %s2572_s22, %s2436_s28, %s2436_s28, %s2437_s25  }
  0x59   : > { %s537_s21 = scalar_lea.hbm %s3413_s12, %s2557_s24  ;;  %s532_s15 = scalar_lea.vmem [#allocation13], %s2554_s23 }
  0x5a   : > { %s538_s20 = sshll.u32 %s537_s21, 4  ;;  %s540_s27 = sshll.u32 %s532_s15, 4  ;;  %s539_s20 = int_to_ptr.hbm [resolvable:$true] %s538_s20  ;;  %s541_s27 = int_to_ptr.vmem [resolvable:$true] %s540_s27 }
  0x5b   : > { %s2323_s16 = sshra.s32 %s539_s20, 4  ;;  %s2330_s10 = scalar_lea.hbm %s3413_s12, 512  ;;  %s2324_s16 = int_to_ptr.hbm [resolvable:$true] %s2323_s16 }
  0x5c   : > { %s2325_s17 = scalar_lea.hbm %s2324_s16, 256  ;;  %p2331_p8 = scmp.lt.s32.totalorder %s2324_s16, %s3413_s12 }
  0x5d   : > { %p2326_p3 = scmp.ne.s32.totalorder %s2324_s16, %s2325_s17  ;;  %p2332_p9 = scmp.lt.s32.totalorder %s2330_s10, %s2325_s17 }
  0x5f   : > { %p2328_p4 = pnand %p2326_p3, %p2192_p7  ;;  %p2333_p11 = por %p2332_p9, %p2331_p8 }
  0x61   : > { %p2329_p6 = pneg %p2328_p4 }
  0x63   : > { %p2334_p12 = pnand %p2333_p11, %p2329_p6 }
  0x65   : > { %2337 = shalt.err (!%p2334_p12)
}
  0x66   : > { %2128 = dma.hbm_to_vmem [thread:$0]  (!%p2566_p5), %s539_s20, 4096, %s541_s27, %s2595_s19, %s2436_s28, %s2436_s28, %s2437_s25  }
  0x67   : > { %558 = sbr.rel (%p2624_p1) target bundleno = 1096 (0x448), region = 76 }
  0x6c   : > { %2398 = dma.done.wait (%p180_p10), [#allocation4], 1024  }
  0x6d   : > { %2400 = vsyncadd (%p180_p10), [#allocation4], 4294966272 }
  0x6e   : > { %2402 = dma.done.wait (%p180_p10), [#allocation6], 32  }
  0x6f   : > { %2404 = vsyncadd (%p180_p10), [#allocation6], 4294967264  ;;  %s570_s23 = sand.u32 1, %s2610_s3   ;;  %s572_s24 = sand.u32 1, %s2423_s30  }
  0x70   : > { %s1999_s18 = sshll.u32 %s572_s24, 8  ;;  %s571_s19 = scalar_lea.sflag [#allocation9], %s570_s23 }
  0x71   : > { %s2693_s6 = scalar_lea.vmem [#allocation8], %s1999_s18 }
  0x72   : > { %2406 = dma.done.wait (%p2619_p13), %s571_s19, 8192  }
  0x73   : > { %2408 = vsyncadd (%p2619_p13), %s571_s19, 4294959104  ;;  %s2699_s28 = scalar_lea.vmem [#allocation10], %s1999_s18  ;;  %s591_s25 = scalar_lea.sflag [#allocation12], %s570_s23 }
  0x74   : > { %s2701_s0 = scalar_lea.vmem [#allocation11], %s1999_s18 }
  0x75   : > { %2410 = dma.done.wait (%p2619_p13), %s591_s25, 8192  }
  0x76   : > { %2412 = vsyncadd (%p2619_p13), %s591_s25, 4294959104  ;;  %s2707_s2 = scalar_lea.vmem [#allocation13], %s1999_s18 }
  0x77   : > { %610 = sfence }
  0x78   : > { %p675_p5 = scmp.lt.s32.totalorder %s2610_s3, 1 }
  0x7a   : > { %s2713_s21 = scalar_select %p675_p5, %s2610_s3, 1 }
  0x7b   : > { %692 = sbr.rel (%p1981_p0) target bundleno = 138 (0x8a), region = 104 }
  0x7c   : > { %s2003_s20 = sshll.u32 %s2713_s21, 1  ;;  %s681_s16 = scalar_lea.vmem %s3410_s9, %s2713_s21 }
  0x7d   : > { %s2723_s26 = scalar_lea.vmem %s3408_s7, %s2003_s20  ;;  %s2728_s22 = scalar_lea.vmem %s3412_s11, %s2003_s20 }
  0x7e   : > { %s688_s24 = scalar_lea.vmem %s3414_s13, %s2713_s21 }
  0x80   : > { %v693_v0 = vld [vmem:[#allocation3] sm:$0xff]  ;;  %v694_v1 = vld [vmem:[#allocation3 + $0x8] sm:$0xff]  ;;  %v695_v2 = vld [vmem:[#allocation3 + $0x10] sm:$0xff]  ;;  %v2439_v8 = vmov 0.0  }
  0x81   : > { %701 = vst [vmem:[#allocation14] sm:$0xff] %v693_v0  ;;  %v696_v3 = vld [vmem:[#allocation3 + $0x18] sm:$0xff]  ;;  %v697_v4 = vld [vmem:[#allocation3 + $0x20] sm:$0xff]  ;;  %v698_v5 = vld [vmem:[#allocation3 + $0x28] sm:$0xff] }
  0x82   : > { %702 = vst [vmem:[#allocation14 + $0x8] sm:$0xff] %v694_v1  ;;  %v699_v6 = vld [vmem:[#allocation3 + $0x30] sm:$0xff]  ;;  %v700_v7 = vld [vmem:[#allocation3 + $0x38] sm:$0xff] }
  0x83   : > { %703 = vst [vmem:[#allocation14 + $0x10] sm:$0xff] %v695_v2 }
  0x84   : > { %704 = vst [vmem:[#allocation14 + $0x18] sm:$0xff] %v696_v3 }
  0x85   : > { %705 = vst [vmem:[#allocation14 + $0x20] sm:$0xff] %v697_v4 }
  0x86   : > { %706 = vst [vmem:[#allocation14 + $0x28] sm:$0xff] %v698_v5 }
  0x87   : > { %707 = vst [vmem:[#allocation14 + $0x30] sm:$0xff] %v699_v6 }
  0x88   : > { %708 = vst [vmem:[#allocation14 + $0x38] sm:$0xff] %v700_v7 }
  0x89   : > { %709 = vst [vmem:[#allocation2] sm:$0xff] %v2439_v8 }
  0x8a PF: > { %v725_v9 = vld [vmem:[%s3405_s4 + $0x38] sm:$0xff]  ;;  %v724_v10 = vld [vmem:[%s3405_s4 + $0x30] sm:$0xff]  ;;  %v2440_v11 = vmov 0   ;;  %v723_v15 = vld [vmem:[%s3405_s4 + $0x28] sm:$0xff]  ;;  %s3440_s1 = sld [smem:[#allocation24_spill]]  ;;  %s2022_s23 = sshll.u32 %s2610_s3, 7 }
  0x8b   : > { %2181 = vset.pattern.permute.xlu2 %v2440_v11  ;;  %2180 = vset.pattern.permute.xlu1 %v2440_v11  ;;  %vm867_vm0 = vcmp.eq.s32.totalorder %v725_v9, 2  ;;  %vm735_vm1 = vcmp.eq.s32.totalorder %v725_v9, 0  ;;  %vm734_vm2 = vcmp.eq.s32.totalorder %v724_v10, 0  ;;  %vm801_vm3 = vcmp.eq.s32.totalorder %v725_v9, 1  ;;  %v722_v22 = vld [vmem:[%s3405_s4 + $0x20] sm:$0xff]  ;;  %v721_v26 = vld [vmem:[%s3405_s4 + $0x18] sm:$0xff] }
  0x8c   : > { %2179 = vset.pattern.permute.xlu0 %v2440_v11  ;;  %v875_v12 = vsel %vm867_vm0, 1, %v2440_v11  ;;  %v743_v13 = vsel %vm735_vm1, 1, %v2440_v11  ;;  %v742_v14 = vsel %vm734_vm2, 1, %v2440_v11  ;;  %vm733_vm4 = vcmp.eq.s32.totalorder %v723_v15, 0  ;;  %v720_v30 = vld [vmem:[%s3405_s4 + $0x10] sm:$0xff]  ;;  %v719_v37 = vld [vmem:[%s3405_s4 + $0x8] sm:$0xff] }
  0x8d   : > { %898 = vperm.xlu2 %2181, %v875_v12   ;;  %766 = vperm.xlu0 %2179, %v743_v13   ;;  %vm800_vm5 = vcmp.eq.s32.totalorder %v724_v10, 1  ;;  %v809_v16 = vsel %vm801_vm3, 1, %v2440_v11  ;;  %v741_v17 = vsel %vm733_vm4, 1, %v2440_v11  ;;  %vm799_vm6 = vcmp.eq.s32.totalorder %v723_v15, 1  ;;  %v718_v41 = vld [vmem:[%s3405_s4] sm:$0xff]  ;;  %s3441_s18 = sld [smem:[#allocation26_spill]] }
  0x8e   : > { %763 = vperm.xlu1 %2180, %v742_v14   ;;  %v808_v18 = vsel %vm800_vm5, 1, %v2440_v11  ;;  %vm933_vm7 = vcmp.eq.s32.totalorder %v725_v9, 3  ;;  %vm866_vm8 = vcmp.eq.s32.totalorder %v724_v10, 2  ;;  %v807_v19 = vsel %vm799_vm6, 1, %v2440_v11  ;;  %s3442_s20 = sld [smem:[#allocation25_spill]]  ;;  %p2134_p7 = scmp.eq.s32.totalorder %s2610_s3, 1 }
  0x8f   : > { %v941_v20 = vsel %vm933_vm7, 1, %v2440_v11  ;;  %v874_v21 = vsel %vm866_vm8, 1, %v2440_v11  ;;  %vm865_vm9 = vcmp.eq.s32.totalorder %v723_v15, 2  ;;  %vm732_vm10 = vcmp.eq.s32.totalorder %v722_v22, 0  ;;  %v717_v4 = vld [vmem:[#allocation14 + $0x38] sm:$0xff]  ;;  %s3445_s25 = sld [smem:[#allocation29_spill]] }
  0x90   : > { %vm798_vm11 = vcmp.eq.s32.totalorder %v722_v22, 1  ;;  %v873_v23 = vsel %vm865_vm9, 1, %v2440_v11  ;;  %v740_v24 = vsel %vm732_vm10, 1, %v2440_v11  ;;  %vm932_vm12 = vcmp.eq.s32.totalorder %v724_v10, 3  ;;  %v2797_v55 = vld [vmem:[#allocation2] ss:$0 sm:$0xff] }
  0x91   : > { %v806_v25 = vsel %vm798_vm11, 1, %v2440_v11  ;;  %vm797_vm13 = vcmp.eq.s32.totalorder %v721_v26, 1  ;;  %vm731_vm14 = vcmp.eq.s32.totalorder %v721_v26, 0  ;;  %v940_v27 = vsel %vm932_vm12, 1, %v2440_v11  ;;  %v2799_v56 = vld [vmem:[#allocation2 + $0x1] ss:$0 sm:$0xff] }
  0x92   : > { %v805_v28 = vsel %vm797_vm13, 1, %v2440_v11  ;;  %v739_v29 = vsel %vm731_vm14, 1, %v2440_v11  ;;  %vm864_vm15 = vcmp.eq.s32.totalorder %v722_v22, 2  ;;  %vm730_vm0 = vcmp.eq.s32.totalorder %v720_v30, 0  ;;  %v2801_v57 = vld [vmem:[#allocation2 + $0x2] ss:$0 sm:$0xff] }
  0x93   : > { %vm931_vm1 = vcmp.eq.s32.totalorder %v723_v15, 3  ;;  %v872_v31 = vsel %vm864_vm15, 1, %v2440_v11  ;;  %v738_v32 = vsel %vm730_vm0, 1, %v2440_v11  ;;  %vm796_vm2 = vcmp.eq.s32.totalorder %v720_v30, 1  ;;  %v2805_v61 = vld [vmem:[#allocation2 + $0x3] ss:$0 sm:$0xff] }
  0x94   : > { %v939_v33 = vsel %vm931_vm1, 1, %v2440_v11  ;;  %vm930_vm3 = vcmp.eq.s32.totalorder %v722_v22, 3  ;;  %vm863_vm4 = vcmp.eq.s32.totalorder %v721_v26, 2  ;;  %v804_v34 = vsel %vm796_vm2, 1, %v2440_v11  ;;  %s2442_s14 = smov 128   ;;  %s2443_s10 = smov 8  }
  0x95   : > { %832 = vperm.xlu0 %2179, %v809_v16   ;;  %760 = vperm.xlu2 %2181, %v741_v17   ;;  %v938_v35 = vsel %vm930_vm3, 1, %v2440_v11  ;;  %v871_v36 = vsel %vm863_vm4, 1, %v2440_v11  ;;  %vm862_vm5 = vcmp.eq.s32.totalorder %v720_v30, 2  ;;  %vm729_vm6 = vcmp.eq.s32.totalorder %v719_v37, 0  ;;  %s1796_s15 = sshll.u32 %s3445_s25, 4  ;;  %s1797_s15 = int_to_ptr.hbm [resolvable:$true] %s1796_s15 }
  0x96   : > { %829 = vperm.xlu1 %2180, %v808_v18   ;;  %vm795_vm7 = vcmp.eq.s32.totalorder %v719_v37, 1  ;;  %v870_v38 = vsel %vm862_vm5, 1, %v2440_v11  ;;  %v737_v39 = vsel %vm729_vm6, 1, %v2440_v11  ;;  %vm929_vm8 = vcmp.eq.s32.totalorder %v721_v26, 3 }
  0x97   : > { %v803_v40 = vsel %vm795_vm7, 1, %v2440_v11  ;;  %vm794_vm9 = vcmp.eq.s32.totalorder %v718_v41, 1  ;;  %vm728_vm10 = vcmp.eq.s32.totalorder %v718_v41, 0  ;;  %v937_v42 = vsel %vm929_vm8, 1, %v2440_v11 }
  0x98   : > { %v802_v43 = vsel %vm794_vm9, 1, %v2440_v11  ;;  %v736_v44 = vsel %vm728_vm10, 1, %v2440_v11  ;;  %vm861_vm11 = vcmp.eq.s32.totalorder %v719_v37, 2  ;;  %vm860_vm12 = vcmp.eq.s32.totalorder %v718_v41, 2 }
  0x99   : > { %vm928_vm13 = vcmp.eq.s32.totalorder %v720_v30, 3  ;;  %v869_v45 = vsel %vm861_vm11, 1, %v2440_v11  ;;  %v868_v46 = vsel %vm860_vm12, 1, %v2440_v11  ;;  %vm927_vm14 = vcmp.eq.s32.totalorder %v719_v37, 3 }
  0x9a   : > { %v936_v47 = vsel %vm928_vm13, 1, %v2440_v11  ;;  %vm926_vm15 = vcmp.eq.s32.totalorder %v718_v41, 3  ;;  %v935_v48 = vsel %vm927_vm14, 1, %v2440_v11 }
  0x9b   : > { %v934_v49 = vsel %vm926_vm15, 1, %v2440_v11 }
  0x9d   : > { %826 = vperm.xlu0 %2179, %v807_v19   ;;  %964 = vperm.xlu2 %2181, %v941_v20  }
  0x9e   : > { %895 = vperm.xlu1 %2180, %v874_v21  }
  0xa5   : > { %892 = vperm.xlu2 %2181, %v873_v23   ;;  %757 = vperm.xlu0 %2179, %v740_v24   ;;  %v716_v24 = vld [vmem:[#allocation14 + $0x30] sm:$0xff] }
  0xa6   : > { %823 = vperm.xlu1 %2180, %v806_v25  }
  0xad   : > { %961 = vperm.xlu0 %2179, %v940_v27   ;;  %820 = vperm.xlu2 %2181, %v805_v28  }
  0xae   : > { %754 = vperm.xlu1 %2180, %v739_v29  }
  0xb5   : > { %889 = vperm.xlu0 %2179, %v872_v31   ;;  %751 = vperm.xlu2 %2181, %v738_v32  }
  0xb6   : > { %958 = vperm.xlu1 %2180, %v939_v33  }
  0xbd   : > { %817 = vperm.xlu0 %2179, %v804_v34   ;;  %955 = vperm.xlu2 %2181, %v938_v35  }
  0xbe   : > { %886 = vperm.xlu1 %2180, %v871_v36  }
  0xc5   : > { %883 = vperm.xlu2 %2181, %v870_v38   ;;  %748 = vperm.xlu0 %2179, %v737_v39  }
  0xc6   : > { %814 = vperm.xlu1 %2180, %v803_v40  }
  0xcd   : > { %952 = vperm.xlu0 %2179, %v937_v42   ;;  %811 = vperm.xlu2 %2181, %v802_v43  }
  0xce   : > { %745 = vperm.xlu1 %2180, %v736_v44  }
  0xd5   : > { %880 = vperm.xlu0 %2179, %v869_v45   ;;  %877 = vperm.xlu2 %2181, %v868_v46   ;;  %v715_v45 = vld [vmem:[#allocation14 + $0x28] sm:$0xff] }
  0xd6   : > { %949 = vperm.xlu1 %2180, %v936_v47  }
  0xdd   : > { %946 = vperm.xlu0 %2179, %v935_v48   ;;  %v714_v48 = vld [vmem:[#allocation14 + $0x20] sm:$0xff] }
  0xde   : > { %943 = vperm.xlu1 %2180, %v934_v49  }
  0xe7   : > { %v899_v50 = vpop.permute.xlu2 %898 }
  0xe8   : > { %vm907_vm1 = vcmp.eq.s32.totalorder %v899_v50, 1 }
  0xe9   : > { %v916_v1 = vsel %vm907_vm1, %v2801_v57, 0.0 }
  0xef   : > { %v2795_v51 = vpop.permute.xlu2 %760 }
  0xf0   : > { %vm773_vm9 = vcmp.eq.s32.totalorder %v2795_v51, 1 }
  0xf1   : > { %v782_v28 = vsel %vm773_vm9, %v2797_v55, 0.0 }
  0xf7   : > { %v965_v52 = vpop.permute.xlu2 %964 }
  0xf8   : > { %vm973_vm3 = vcmp.eq.s32.totalorder %v965_v52, 1 }
  0xf9   : > { %v982_v3 = vsel %vm973_vm3, %v2805_v61, 0.0 }
  0xff   : > { %v767_v53 = vpop.permute.xlu0 %766  ;;  %v2803_v58 = vpop.permute.xlu2 %892 }
 0x100   : > { %v764_v54 = vpop.permute.xlu1 %763  ;;  %vm775_vm0 = vcmp.eq.s32.totalorder %v767_v53, 1  ;;  %vm905_vm12 = vcmp.eq.s32.totalorder %v2803_v58, 1 }
 0x101   : > { %v784_v62 = vsel %vm775_vm0, %v2797_v55, 0.0  ;;  %vm774_vm5 = vcmp.eq.s32.totalorder %v764_v54, 1  ;;  %v914_v39 = vsel %vm905_vm12, %v2801_v57, 0.0 }
 0x102   : > { %v783_v18 = vsel %vm774_vm5, %v2797_v55, 0.0 }
 0x107   : > { %v833_v59 = vpop.permute.xlu0 %832  ;;  %v2818_v9 = vpop.permute.xlu2 %820 }
 0x108   : > { %vm841_vm2 = vcmp.eq.s32.totalorder %v833_v59, 1  ;;  %v830_v60 = vpop.permute.xlu1 %829 }
 0x109   : > { %v850_v63 = vsel %vm841_vm2, %v2799_v56, 0.0  ;;  %vm840_vm4 = vcmp.eq.s32.totalorder %v830_v60, 1 }
 0x10a   : > { %v858_v0 = vadd.f32 %v850_v63, %v784_v62  ;;  %v849_v16 = vsel %vm840_vm4, %v2799_v56, 0.0 }
 0x10b   : > { %v857_v20 = vadd.f32 %v849_v16, %v783_v18 }
 0x10c   : > { %v924_v2 = vadd.f32 %v916_v1, %v858_v0 }
 0x10e   : > { %v990_v5 = vadd.f32 %v982_v3, %v924_v2 }
 0x10f   : > { %v2814_v6 = vpop.permute.xlu0 %826  ;;  %v2838_v17 = vpop.permute.xlu2 %751 }
 0x110   : > { %v2816_v7 = vadd.f32 %v990_v5, %v717_v4  ;;  %v896_v8 = vpop.permute.xlu1 %895  ;;  %vm839_vm7 = vcmp.eq.s32.totalorder %v2814_v6, 1 }
 0x111   : > { %vm906_vm6 = vcmp.eq.s32.totalorder %v896_v8, 1  ;;  %v848_v26 = vsel %vm839_vm7, %v2799_v56, 0.0 }
 0x112   : > { %v2822_v10 = vsel %vm841_vm2, %v2816_v7, 0.0  ;;  %1104 = vmatpush.msra.mxu0 %v2816_v7  ;;  %v2826_v11 = vsel %vm973_vm3, %v2816_v7, 0.0  ;;  %v2830_v12 = vsel %vm775_vm0, %v2816_v7, 0.0  ;;  %v2834_v13 = vsel %vm907_vm1, %v2816_v7, 0.0 }
 0x113   : > { %v915_v19 = vsel %vm906_vm6, %v2801_v57, 0.0  ;;  %v856_v30 = vadd.f32 %v848_v26, %v782_v28  ;;  %vm837_vm1 = vcmp.eq.s32.totalorder %v2818_v9, 1 }
 0x114   : > { %v923_v22 = vadd.f32 %v915_v19, %v857_v20  ;;  %v846_v8 = vsel %vm837_vm1, %v2799_v56, 0.0 }
 0x115   : > { %v922_v43 = vadd.f32 %v914_v39, %v856_v30 }
 0x117   : > { %v758_v14 = vpop.permute.xlu0 %757  ;;  %v956_v33 = vpop.permute.xlu2 %955 }
 0x118   : > { %v824_v15 = vpop.permute.xlu1 %823  ;;  %vm772_vm11 = vcmp.eq.s32.totalorder %v758_v14, 1  ;;  %vm970_vm13 = vcmp.eq.s32.totalorder %v956_v33, 1 }
 0x119   : > { %vm838_vm10 = vcmp.eq.s32.totalorder %v824_v15, 1  ;;  %v781_v32 = vsel %vm772_vm11, %v2797_v55, 0.0  ;;  %v979_v47 = vsel %vm970_vm13, %v2805_v61, 0.0 }
 0x11a   : > { %v847_v31 = vsel %vm838_vm10, %v2799_v56, 0.0 }
 0x11b   : > { %v855_v40 = vadd.f32 %v847_v31, %v781_v32 }
 0x11f   : > { %v962_v21 = vpop.permute.xlu0 %961  ;;  %v884_v3 = vpop.permute.xlu2 %883 }
 0x120   : > { %vm972_vm8 = vcmp.eq.s32.totalorder %v962_v21, 1  ;;  %v2845_v23 = vpop.permute.xlu1 %754  ;;  %v713_v21 = vld [vmem:[#allocation14 + $0x18] sm:$0xff] }
 0x121   : > { %v981_v25 = vsel %vm972_vm8, %v2805_v61, 0.0  ;;  %vm771_vm0 = vcmp.eq.s32.totalorder %v2845_v23, 1 }
 0x122   : > { %v989_v27 = vadd.f32 %v981_v25, %v923_v22  ;;  %v780_v6 = vsel %vm771_vm0, %v2797_v55, 0.0 }
 0x123   : > { %v854_v15 = vadd.f32 %v846_v8, %v780_v6 }
 0x124   : > { %v2856_v29 = vadd.f32 %v989_v27, %v716_v24 }
 0x126   : > { %v2865_v34 = vsel %vm774_vm5, %v2856_v29, 0.0  ;;  %v2869_v35 = vsel %vm840_vm4, %v2856_v29, 0.0  ;;  %v2873_v36 = vsel %vm972_vm8, %v2856_v29, 0.0  ;;  %1105 = vmatpush.msra.mxu0 %v2856_v29  ;;  %v2878_v38 = vsel %vm906_vm6, %v2856_v29, 0.0 }
 0x127   : > { %v890_v37 = vpop.permute.xlu0 %889  ;;  %v2942_v18 = vpop.permute.xlu2 %811  ;;  %vm770_vm5 = vcmp.eq.s32.totalorder %v2838_v17, 1  ;;  %vm902_vm6 = vcmp.eq.s32.totalorder %v884_v3, 1  ;;  %v711_v17 = vld [vmem:[#allocation14 + $0x8] sm:$0xff] }
 0x128   : > { %vm904_vm14 = vcmp.eq.s32.totalorder %v890_v37, 1  ;;  %v959_v41 = vpop.permute.xlu1 %958  ;;  %v779_v26 = vsel %vm770_vm5, %v2797_v55, 0.0  ;;  %v911_v23 = vsel %vm902_vm6, %v2801_v57, 0.0 }
 0x129   : > { %v913_v42 = vsel %vm904_vm14, %v2801_v57, 0.0  ;;  %vm971_vm15 = vcmp.eq.s32.totalorder %v959_v41, 1 }
 0x12a   : > { %v921_v44 = vadd.f32 %v913_v42, %v855_v40  ;;  %v980_v46 = vsel %vm971_vm15, %v2805_v61, 0.0  ;;  %v712_v42 = vld [vmem:[#allocation14 + $0x10] sm:$0xff] }
 0x12b   : > { %v988_v49 = vadd.f32 %v980_v46, %v922_v43 }
 0x12c   : > { %v987_v50 = vadd.f32 %v979_v47, %v921_v44 }
 0x12d   : > { %v2888_v52 = vadd.f32 %v988_v49, %v715_v45 }
 0x12e   : > { %v2890_v53 = vadd.f32 %v987_v50, %v714_v48 }
 0x12f   : > { %v2895_v54 = vsel %vm773_vm9, %v2888_v52, 0.0  ;;  %v2900_v59 = vsel %vm839_vm7, %v2888_v52, 0.0  ;;  %v2905_v60 = vsel %vm905_vm12, %v2888_v52, 0.0  ;;  %v2908_v62 = vsel %vm971_vm15, %v2888_v52, 0.0  ;;  %1106 = vmatpush.msra.mxu0 %v2888_v52  ;;  %v818_v63 = vpop.permute.xlu0 %817  ;;  %v878_v40 = vpop.permute.xlu2 %877 }
 0x130   : > { %v2913_v51 = vsel %vm772_vm11, %v2890_v53, 0.0  ;;  %v2917_v0 = vsel %vm838_vm10, %v2890_v53, 0.0  ;;  %v2921_v1 = vsel %vm904_vm14, %v2890_v53, 0.0  ;;  %v887_v58 = vpop.permute.xlu1 %886  ;;  %v2926_v2 = vsel %vm970_vm13, %v2890_v53, 0.0 }
 0x131   : > { %1107 = vmatpush.msra.mxu0 %v2890_v53  ;;  %vm903_vm2 = vcmp.eq.s32.totalorder %v887_v58, 1  ;;  %vm836_vm3 = vcmp.eq.s32.totalorder %v818_v63, 1  ;;  %vm834_vm10 = vcmp.eq.s32.totalorder %v2942_v18, 1  ;;  %vm900_vm13 = vcmp.eq.s32.totalorder %v878_v40, 1 }
 0x132   : > { %v912_v14 = vsel %vm903_vm2, %v2801_v57, 0.0  ;;  %v845_v24 = vsel %vm836_vm3, %v2799_v56, 0.0  ;;  %v843_v47 = vsel %vm834_vm10, %v2799_v56, 0.0 }
 0x133   : > { %v920_v19 = vadd.f32 %v912_v14, %v854_v15  ;;  %v853_v28 = vadd.f32 %v845_v24, %v779_v26  ;;  %v909_v15 = vsel %vm900_vm13, %v2801_v57, 0.0 }
 0x135   : > { %v919_v39 = vadd.f32 %v911_v23, %v853_v28 }
 0x137   : > { %v2928_v4 = vpop.permute.xlu0 %748 }
 0x138   : > { %v2931_v5 = vpop.permute.xlu1 %814  ;;  %vm769_vm9 = vcmp.eq.s32.totalorder %v2928_v4, 1 }
 0x139   : > { %vm835_vm8 = vcmp.eq.s32.totalorder %v2931_v5, 1  ;;  %v778_v45 = vsel %vm769_vm9, %v2797_v55, 0.0 }
 0x13a   : > { %v844_v44 = vsel %vm835_vm8, %v2799_v56, 0.0 }
 0x13b   : > { %v852_v58 = vadd.f32 %v844_v44, %v778_v45 }
 0x13f   : > { %v953_v16 = vpop.permute.xlu0 %952 }
 0x140   : > { %vm969_vm4 = vcmp.eq.s32.totalorder %v953_v16, 1  ;;  %v2944_v20 = vpop.permute.xlu1 %745 }
 0x141   : > { %v978_v22 = vsel %vm969_vm4, %v2805_v61, 0.0  ;;  %vm768_vm7 = vcmp.eq.s32.totalorder %v2944_v20, 1 }
 0x142   : > { %v986_v25 = vadd.f32 %v978_v22, %v920_v19  ;;  %v777_v41 = vsel %vm768_vm7, %v2797_v55, 0.0  ;;  %v710_v22 = vld [vmem:[#allocation14] sm:$0xff] }
 0x143   : > { %v851_v48 = vadd.f32 %v843_v47, %v777_v41 }
 0x144   : > { %v2953_v27 = vadd.f32 %v986_v25, %v713_v21  ;;  %v2032_v25 = vld [vmem:[%s3440_s1] sm:$0xff]  }
 0x145   : > { %v917_v21 = vadd.f32 %v909_v15, %v851_v48  ;;  %v2033_v23 = vunpack.c.l.bf16 %v2032_v25  ;;  %v2034_v15 = vunpack.c.h.bf16 %v2032_v25 }
 0x146   : > { %v2958_v30 = vsel %vm771_vm0, %v2953_v27, 0.0  ;;  %v2963_v31 = vsel %vm837_vm1, %v2953_v27, 0.0  ;;  %v2967_v32 = vsel %vm903_vm2, %v2953_v27, 0.0  ;;  %v2970_v33 = vsel %vm969_vm4, %v2953_v27, 0.0  ;;  %1108 = vmatpush.msra.mxu0 %v2953_v27 }
 0x147   : > { %v881_v37 = vpop.permute.xlu0 %880  ;;  %vm1047_vm0 = vcmask 523264  }
 0x148   : > { %v950_v9 = vpop.permute.xlu1 %949  ;;  %vm901_vm12 = vcmp.eq.s32.totalorder %v881_v37, 1 }
 0x149   : > { %vm968_vm11 = vcmp.eq.s32.totalorder %v950_v9, 1  ;;  %v910_v49 = vsel %vm901_vm12, %v2801_v57, 0.0 }
 0x14a   : > { %v977_v43 = vsel %vm968_vm11, %v2805_v61, 0.0  ;;  %v918_v16 = vadd.f32 %v910_v49, %v852_v58 }
 0x14b   : > { %v985_v46 = vadd.f32 %v977_v43, %v919_v39 }
 0x14d   : > { %v2995_v50 = vadd.f32 %v985_v46, %v712_v42 }
 0x14f   : > { %v1539_v6 = vsel %vm770_vm5, %v2995_v50, 0.0  ;;  %v1562_v55 = vsel %vm836_vm3, %v2995_v50, 0.0  ;;  %v1585_v8 = vsel %vm902_vm6, %v2995_v50, 0.0  ;;  %v1608_v56 = vsel %vm968_vm11, %v2995_v50, 0.0  ;;  %1109 = vmatpush.msra.mxu0 %v2995_v50  ;;  %v947_v14 = vpop.permute.xlu0 %946 }
 0x150   : > { %vm967_vm14 = vcmp.eq.s32.totalorder %v947_v14, 1  ;;  %v944_v19 = vpop.permute.xlu1 %943 }
 0x151   : > { %v976_v63 = vsel %vm967_vm14, %v2805_v61, 0.0  ;;  %vm966_vm15 = vcmp.eq.s32.totalorder %v944_v19, 1 }
 0x152   : > { %v984_v3 = vadd.f32 %v976_v63, %v918_v16  ;;  %v975_v24 = vsel %vm966_vm15, %v2805_v61, 0.0 }
 0x153   : > { %v983_v26 = vadd.f32 %v975_v24, %v917_v21  ;;  %v1535_v21 = vlaneseq }
 0x154   : > { %v3016_v57 = vadd.f32 %v984_v3, %v711_v17 }
 0x155   : > { %v3018_v28 = vadd.f32 %v983_v26, %v710_v22 }
 0x156   : > { %v1538_v9 = vsel %vm769_vm9, %v3016_v57, 0.0  ;;  %v1561_v39 = vsel %vm835_vm8, %v3016_v57, 0.0  ;;  %v1584_v61 = vsel %vm901_vm12, %v3016_v57, 0.0  ;;  %v1607_v41 = vsel %vm967_vm14, %v3016_v57, 0.0  ;;  %1110 = vmatpush.msra.mxu0 %v3016_v57 }
 0x157   : > { %v1537_v42 = vsel %vm768_vm7, %v3018_v28, 0.0  ;;  %v1560_v4 = vsel %vm834_vm10, %v3018_v28, 0.0  ;;  %v1583_v5 = vsel %vm900_vm13, %v3018_v28, 0.0  ;;  %v1606_v37 = vsel %vm966_vm15, %v3018_v28, 0.0 }
 0x158   : > { %v1545_v43 = vadd.f32 %v1538_v9, %v1537_v42  ;;  %v1568_v44 = vadd.f32 %v1561_v39, %v1560_v4  ;;  %v1591_v45 = vadd.f32 %v1584_v61, %v1583_v5  ;;  %v1614_v46 = vadd.f32 %v1607_v41, %v1606_v37  ;;  %1111 = vmatpush.msra.mxu0 %v3018_v28 }
 0x159   : > { %2006 = vmatmul.msk.f32.vlgmr.msra.gmra.mxu0 %vm1047_vm0, %v2033_v23 }
 0x15a   : > { %v1546_v20 = vadd.f32 %v1545_v43, %v1539_v6  ;;  %v1569_v47 = vadd.f32 %v1568_v44, %v1562_v55  ;;  %v1592_v48 = vadd.f32 %v1591_v45, %v1585_v8  ;;  %v1615_v49 = vadd.f32 %v1614_v46, %v1608_v56  ;;  %v2080_v43 = vld [vmem:[%s3440_s1 + $0x10] sm:$0xff]  }
 0x15c   : > { %v1547_v18 = vadd.f32 %v1546_v20, %v2958_v30  ;;  %v1570_v40 = vadd.f32 %v1569_v47, %v2963_v31  ;;  %v1616_v58 = vadd.f32 %v1615_v49, %v2970_v33  ;;  %v1593_v14 = vadd.f32 %v1592_v48, %v2967_v32 }
 0x15d   : > { %v2041_v48 = vunpack.c.l.bf16 %v2080_v43 }
 0x15e   : > { %v1617_v16 = vadd.f32 %v1616_v58, %v2926_v2  ;;  %v1548_v19 = vadd.f32 %v1547_v18, %v2913_v51  ;;  %v1571_v17 = vadd.f32 %v1570_v40, %v2917_v0  ;;  %v1594_v6 = vadd.f32 %v1593_v14, %v2921_v1  ;;  %v2079_v51 = vld [vmem:[%s3440_s1 + $0x8] sm:$0xff]   ;;  %v2081_v40 = vld [vmem:[%s3440_s1 + $0x18] sm:$0xff]  }
 0x15f   : > { %v2037_v2 = vunpack.c.l.bf16 %v2079_v51  ;;  %v2042_v18 = vunpack.c.h.bf16 %v2080_v43  ;;  %v2045_v58 = vunpack.c.l.bf16 %v2081_v40  ;;  %v2046_v14 = vunpack.c.h.bf16 %v2081_v40 }
 0x160   : > { %v1618_v55 = vadd.f32 %v1617_v16, %v2908_v62  ;;  %v1549_v8 = vadd.f32 %v1548_v19, %v2895_v54  ;;  %v1572_v30 = vadd.f32 %v1571_v17, %v2900_v59  ;;  %v1595_v31 = vadd.f32 %v1594_v6, %v2905_v60  ;;  %v2083_v17 = vld [vmem:[%s3440_s1 + $0x28] sm:$0xff]  }
 0x161   : > { %2007 = vmatmul.msk.f32.gmra.mxu0 %vm1047_vm0, %v2034_v15  ;;  %v2082_v15 = vld [vmem:[%s3440_s1 + $0x20] sm:$0xff]   ;;  %v2053_v6 = vunpack.c.l.bf16 %v2083_v17 }
 0x162   : > { %v1619_v32 = vadd.f32 %v1618_v55, %v2873_v36  ;;  %v1550_v0 = vadd.f32 %v1549_v8, %v2865_v34  ;;  %v1573_v1 = vadd.f32 %v1572_v30, %v2869_v35  ;;  %v1596_v62 = vadd.f32 %v1595_v31, %v2878_v38  ;;  %v2084_v8 = vld [vmem:[%s3440_s1 + $0x30] sm:$0xff]  }
 0x163   : > { %v2049_v16 = vunpack.c.l.bf16 %v2082_v15  ;;  %v2050_v19 = vunpack.c.h.bf16 %v2082_v15  ;;  %v2054_v55 = vunpack.c.h.bf16 %v2083_v17  ;;  %v2057_v30 = vunpack.c.l.bf16 %v2084_v8 }
 0x164   : > { %v1620_v54 = vadd.f32 %v1619_v32, %v2826_v11  ;;  %v1551_v59 = vadd.f32 %v1550_v0, %v2830_v12  ;;  %v1574_v60 = vadd.f32 %v1573_v1, %v2822_v10  ;;  %v1597_v33 = vadd.f32 %v1596_v62, %v2834_v13  ;;  %v2085_v32 = vld [vmem:[%s3440_s1 + $0x38] sm:$0xff]  }
 0x165   : > { %v1536_v12 = vshrl.u32 %v1535_v21, 7  ;;  %v2038_v13 = vunpack.c.h.bf16 %v2079_v51  ;;  %v2058_v31 = vunpack.c.h.bf16 %v2084_v8  ;;  %v2061_v51 = vunpack.c.l.bf16 %v2085_v32 }
 0x166   : > { %v1552_v36 = vrot.slane %v1551_v59, 4  ;;  %v1575_v56 = vrot.slane %v1574_v60, 4  ;;  %v1621_v63 = vrot.slane %v1620_v54, 4  ;;  %v1598_v3 = vrot.slane %v1597_v33, 4 }
 0x167   : > { %vm1558_vm1 = vcmp.eq.s32.totalorder %v1536_v12, 0  ;;  %vm1581_vm2 = vcmp.eq.s32.totalorder %v1536_v12, 1  ;;  %vm1604_vm3 = vcmp.eq.s32.totalorder %v1536_v12, 2  ;;  %vm1627_vm4 = vcmp.eq.s32.totalorder %v1536_v12, 3 }
 0x168   : > { %v1553_v22 = vadd.f32 %v1552_v36, %v1551_v59  ;;  %v1576_v34 = vadd.f32 %v1575_v56, %v1574_v60  ;;  %v1622_v24 = vadd.f32 %v1621_v63, %v1620_v54  ;;  %v1599_v35 = vadd.f32 %v1598_v3, %v1597_v33 }
 0x169   : > { %2008 = vmatmul.msk.f32.gmra.mxu0 %vm1047_vm0, %v2037_v2  ;;  %v2062_v0 = vunpack.c.h.bf16 %v2085_v32 }
 0x16a   : > { %v1554_v38 = vrot.slane %v1553_v22, 2  ;;  %v1577_v11 = vrot.slane %v1576_v34, 2  ;;  %v1623_v25 = vrot.slane %v1622_v24, 2  ;;  %v1600_v26 = vrot.slane %v1599_v35, 2 }
 0x16c   : > { %v1555_v10 = vadd.f32 %v1554_v38, %v1553_v22  ;;  %v1578_v23 = vadd.f32 %v1577_v11, %v1576_v34  ;;  %v1624_v9 = vadd.f32 %v1623_v25, %v1622_v24  ;;  %v1601_v39 = vadd.f32 %v1600_v26, %v1599_v35  ;;  %v1045_v35 = vld [vmem:[%s3441_s18 + $0x70] sm:$0xff]  ;;  %v1046_v38 = vld [vmem:[%s3441_s18 + $0x78] sm:$0xff]  ;;  %v1044_v11 = vld [vmem:[%s3441_s18 + $0x68] sm:$0xff] }
 0x16e   : > { %v1556_v61 = vrot.slane %v1555_v10, 1  ;;  %v1579_v41 = vrot.slane %v1578_v23, 1  ;;  %v1602_v42 = vrot.slane %v1601_v39, 1  ;;  %v1625_v4 = vrot.slane %v1624_v9, 1 }
 0x170   : > { %v1557_v5 = vadd.f32 %v1556_v61, %v1555_v10  ;;  %v1580_v37 = vadd.f32 %v1579_v41, %v1578_v23  ;;  %v1603_v45 = vadd.f32 %v1602_v42, %v1601_v39  ;;  %v1626_v20 = vadd.f32 %v1625_v4, %v1624_v9  ;;  %v1043_v10 = vld [vmem:[%s3441_s18 + $0x60] sm:$0xff]  ;;  %v1041_v41 = vld [vmem:[%s3441_s18 + $0x50] sm:$0xff] }
 0x171   : > { %2009 = vmatmul.msk.f32.gmra.mxu0 %vm1047_vm0, %v2038_v13  ;;  %v1042_v13 = vld [vmem:[%s3441_s18 + $0x58] sm:$0xff] }
 0x172   : > { %v1559_v44 = vsel %vm1558_vm1, %v1557_v5, 0.0  ;;  %v1040_v5 = vld [vmem:[%s3441_s18 + $0x48] sm:$0xff] }
 0x173   : > { %v1582_v46 = vsel %vm1581_vm2, %v1580_v37, %v1559_v44  ;;  %v1039_v44 = vld [vmem:[%s3441_s18 + $0x40] sm:$0xff] }
 0x174   : > { %v1605_v47 = vsel %vm1604_vm3, %v1603_v45, %v1582_v46 }
 0x175   : > { %v3072_v49 = vsel %vm1627_vm4, %v1626_v20, %v1605_v47  ;;  %v1038_v20 = vld [vmem:[%s3441_s18 + $0x38] sm:$0xff] }
 0x179   : > { %2010 = vmatmul.msk.f32.gmra.mxu0 %vm1047_vm0, %v2041_v48 }
 0x181   : > { %2011 = vmatmul.msk.f32.gmra.mxu0 %vm1047_vm0, %v2042_v18  ;;  %v1037_v18 = vld [vmem:[%s3441_s18 + $0x30] sm:$0xff] }
 0x189   : > { %2012 = vmatmul.msk.f32.gmra.mxu0 %vm1047_vm0, %v2045_v58 }
 0x191   : > { %2013 = vmatmul.msk.f32.gmra.mxu0 %vm1047_vm0, %v2046_v14  ;;  %v1036_v14 = vld [vmem:[%s3441_s18 + $0x28] sm:$0xff] }
 0x199   : > { %2014 = vmatmul.msk.f32.gmra.mxu0 %vm1047_vm0, %v2049_v16 }
 0x1a1   : > { %2015 = vmatmul.msk.f32.gmra.mxu0 %vm1047_vm0, %v2050_v19  ;;  %v1035_v19 = vld [vmem:[%s3441_s18 + $0x20] sm:$0xff] }
 0x1a9   : > { %2016 = vmatmul.msk.f32.gmra.mxu0 %vm1047_vm0, %v2053_v6 }
 0x1b1   : > { %2017 = vmatmul.msk.f32.gmra.mxu0 %vm1047_vm0, %v2054_v55  ;;  %v1034_v55 = vld [vmem:[%s3441_s18 + $0x18] sm:$0xff] }
 0x1b9   : > { %2018 = vmatmul.msk.f32.gmra.mxu0 %vm1047_vm0, %v2057_v30 }
 0x1c1   : > { %2019 = vmatmul.msk.f32.gmra.mxu0 %vm1047_vm0, %v2058_v31  ;;  %v1033_v31 = vld [vmem:[%s3441_s18 + $0x10] sm:$0xff] }
 0x1c9   : > { %2020 = vmatmul.msk.f32.gmra.mxu0 %vm1047_vm0, %v2061_v51 }
 0x1d1   : > { %2021 = vmatmul.msk.f32.gmra.mxu0 %vm1047_vm0, %v2062_v0  ;;  %v1032_v0 = vld [vmem:[%s3441_s18 + $0x8] sm:$0xff] }
 0x1d6   : > { %v3101_v1 = vpop.f32.mrf.mxu0 }
 0x1de   : > { %v3103_v62 = vpop.f32.mrf.mxu0 }
 0x1e6   : > { %v3105_v54 = vpop.f32.mrf.mxu0 }
 0x1ee   : > { %v1122_v59 = vpop.f32.mrf.mxu0 }
 0x1ef   : > { %v1123_v32 = vadd.f32 %v1122_v59, %v1034_v55 }
 0x1f6   : > { %v1125_v60 = vpop.f32.mrf.mxu0 }
 0x1f7   : > { %v1126_v8 = vadd.f32 %v1125_v60, %v1035_v19  ;;  %v1031_v60 = vld [vmem:[%s3441_s18] sm:$0xff] }
 0x1f8   : > { %v1114_v59 = vadd.f32 %v3101_v1, %v1031_v60  ;;  %v1260_v19 = vld [vmem:[%s2693_s6 + $0x38] sm:$0xff]  ;;  %v1652_v60 = vld [vmem:[%s2701_s0 + $0xb0] sm:$0xff] }
 0x1fe   : > { %v1128_v2 = vpop.f32.mrf.mxu0 }
 0x1ff   : > { %v1129_v17 = vadd.f32 %v1128_v2, %v1036_v14  ;;  %v1120_v2 = vadd.f32 %v3105_v54, %v1033_v31  ;;  %v1261_v14 = vld [vmem:[%s2693_s6 + $0x40] sm:$0xff] }
 0x200   : > { %v1253_v31 = vld [vmem:[%s2693_s6] sm:$0xff] }
 0x201   : > { %v1166_v51 = vmax.f32 %v1129_v17, 0.0  ;;  %v1257_v17 = vld [vmem:[%s2693_s6 + $0x20] sm:$0xff] }
 0x206   : > { %v1131_v33 = vpop.f32.mrf.mxu0 }
 0x207   : > { %v1132_v15 = vadd.f32 %v1131_v33, %v1037_v18  ;;  %v1165_v33 = vmax.f32 %v1126_v8, 0.0  ;;  %v1263_v18 = vld [vmem:[%s2693_s6 + $0x50] sm:$0xff] }
 0x208   : > { %v1255_v8 = vld [vmem:[%s2693_s6 + $0x10] sm:$0xff] }
 0x209   : > { %v1167_v30 = vmax.f32 %v1132_v15, 0.0  ;;  %v1262_v15 = vld [vmem:[%s2693_s6 + $0x48] sm:$0xff] }
 0x20e   : > { %v1134_v36 = vpop.f32.mrf.mxu0 }
 0x20f   : > { %v1135_v40 = vadd.f32 %v1134_v36, %v1038_v20  ;;  %v1117_v36 = vadd.f32 %v3103_v62, %v1032_v0  ;;  %v2086_v62 = vld [vmem:[%s3442_s20 + $0x8] sm:$0xff]  }
 0x210   : > { %v1265_v20 = vld [vmem:[%s2693_s6 + $0x60] sm:$0xff] }
 0x211   : > { %v1168_v6 = vmax.f32 %v1135_v40, 0.0  ;;  %v1162_v54 = vmax.f32 %v1117_v36, 0.0  ;;  %v1264_v40 = vld [vmem:[%s2693_s6 + $0x58] sm:$0xff]  ;;  %v1658_v0 = vld [vmem:[%s2701_s0 + $0xe0] sm:$0xff] }
 0x212   : > { %v1650_v36 = vld [vmem:[%s2701_s0 + $0xa0] sm:$0xff] }
 0x216   : > { %v1137_v56 = vpop.f32.mrf.mxu0 }
 0x217   : > { %v1138_v47 = vadd.f32 %v1137_v56, %v1039_v44  ;;  %v1164_v56 = vmax.f32 %v1123_v32, 0.0  ;;  %v1270_v44 = vld [vmem:[%s2693_s6 + $0x88] sm:$0xff] }
 0x218   : > { %v1254_v32 = vld [vmem:[%s2693_s6 + $0x8] sm:$0xff] }
 0x219   : > { %v1169_v16 = vmax.f32 %v1138_v47, 0.0  ;;  %v1266_v47 = vld [vmem:[%s2693_s6 + $0x68] sm:$0xff] }
 0x21e   : > { %v1140_v63 = vpop.f32.mrf.mxu0 }
 0x21f   : > { %v1141_v45 = vadd.f32 %v1140_v63, %v1040_v5  ;;  %v1163_v63 = vmax.f32 %v1120_v2, 0.0  ;;  %v1272_v5 = vld [vmem:[%s2693_s6 + $0x98] sm:$0xff]  ;;  %v1656_v2 = vld [vmem:[%s2701_s0 + $0xd0] sm:$0xff] }
 0x221   : > { %v1170_v58 = vmax.f32 %v1141_v45, 0.0  ;;  %v1267_v45 = vld [vmem:[%s2693_s6 + $0x70] sm:$0xff] }
 0x226   : > { %v1143_v21 = vpop.f32.mrf.mxu0 }
 0x227   : > { %v1144_v37 = vadd.f32 %v1143_v21, %v1041_v41  ;;  %v2064_v21 = vld [vmem:[%s3442_s20] sm:$0xff]   ;;  %v1273_v41 = vld [vmem:[%s2693_s6 + $0xa0] sm:$0xff] }
 0x228   : > { %v2066_v1 = vunpack.c.h.bf16 %v2064_v21 }
 0x229   : > { %v1171_v48 = vmax.f32 %v1144_v37, 0.0 }
 0x22e   : > { %v1146_v3 = vpop.f32.mrf.mxu0 }
 0x22f   : > { %v1147_v42 = vadd.f32 %v1146_v3, %v1042_v13  ;;  %v2065_v3 = vunpack.c.l.bf16 %v2064_v21  ;;  %v1278_v13 = vld [vmem:[%s2693_s6 + $0xc8] sm:$0xff]  ;;  %v1642_v21 = vld [vmem:[%s2701_s0 + $0x60] sm:$0xff] }
 0x231   : > { %v1172_v46 = vmax.f32 %v1147_v42, 0.0  ;;  %v1274_v42 = vld [vmem:[%s2693_s6 + $0xa8] sm:$0xff] }
 0x236   : > { %v1149_v22 = vpop.f32.mrf.mxu0 }
 0x237   : > { %v1150_v39 = vadd.f32 %v1149_v22, %v1043_v10  ;;  %v1161_v22 = vmax.f32 %v1114_v59, 0.0  ;;  %v1280_v10 = vld [vmem:[%s2693_s6 + $0xd8] sm:$0xff]  ;;  %v1646_v59 = vld [vmem:[%s2701_s0 + $0x80] sm:$0xff] }
 0x239   : > { %v1173_v43 = vmax.f32 %v1150_v39, 0.0  ;;  %v1275_v39 = vld [vmem:[%s2693_s6 + $0xb0] sm:$0xff] }
 0x23e   : > { %v1152_v34 = vpop.f32.mrf.mxu0 }
 0x23f   : > { %v1153_v23 = vadd.f32 %v1152_v34, %v1044_v11  ;;  %v2069_v34 = vunpack.c.l.bf16 %v2086_v62  ;;  %v1281_v11 = vld [vmem:[%s2693_s6 + $0xe0] sm:$0xff] }
 0x241   : > { %v1174_v4 = vmax.f32 %v1153_v23, 0.0 }
 0x246   : > { %v1155_v24 = vpop.f32.mrf.mxu0 }
 0x247   : > { %v1156_v12 = vadd.f32 %v1155_v24, %v1045_v35  ;;  %v2070_v24 = vunpack.c.h.bf16 %v2086_v62  ;;  %v1283_v35 = vld [vmem:[%s2693_s6 + $0xf0] sm:$0xff] }
 0x248   : > { %1291 = vmatpush.msra.mxu2 %v1283_v35  ;;  %v1640_v62 = vld [vmem:[%s2701_s0 + $0x50] sm:$0xff]  ;;  %v1634_v35 = vld [vmem:[%s2701_s0 + $0x20] sm:$0xff] }
 0x249   : > { %v1175_v61 = vmax.f32 %v1156_v12, 0.0  ;;  %v1282_v12 = vld [vmem:[%s2693_s6 + $0xe8] sm:$0xff] }
 0x24a   : > { %1292 = vmatpush.msra.mxu2 %v1281_v11 }
 0x24e   : > { %v1158_v25 = vpop.f32.mrf.mxu0 }
 0x24f   : > { %v1159_v26 = vadd.f32 %v1158_v25, %v1046_v38  ;;  %v1284_v38 = vld [vmem:[%s2693_s6 + $0xf8] sm:$0xff]  ;;  %v2087_v25 = vld [vmem:[%s3442_s20 + $0x10] sm:$0xff]  }
 0x250   : > { %1332 = vmatpush.msra.mxu3 %v1284_v38  ;;  %v2073_v23 = vunpack.c.l.bf16 %v2087_v25  ;;  %v2074_v37 = vunpack.c.h.bf16 %v2087_v25  ;;  %v1632_v25 = vld [vmem:[%s2701_s0 + $0x10] sm:$0xff] }
 0x251   : > { %v1176_v9 = vmax.f32 %v1159_v26, 0.0  ;;  %v1279_v26 = vld [vmem:[%s2693_s6 + $0xd0] sm:$0xff] }
 0x252   : > { %1333 = vmatpush.msra.mxu3 %v1282_v12  ;;  %1293 = vmatpush.msra.mxu2 %v1279_v26  ;;  %v1630_v12 = vld [vmem:[%s2701_s0] sm:$0xff]  ;;  %v1661_v26 = vld [vmem:[%s2701_s0 + $0xf8] sm:$0xff] }
 0x253   : > { %1193 = vmatpush.msra.mxu1 %v1176_v9  ;;  %v1277_v9 = vld [vmem:[%s2693_s6 + $0xc0] sm:$0xff] }
 0x254   : > { %1334 = vmatpush.msra.mxu3 %v1280_v10  ;;  %1294 = vmatpush.msra.mxu2 %v1277_v9  ;;  %v1659_v10 = vld [vmem:[%s2701_s0 + $0xe8] sm:$0xff] }
 0x255   : > { %1194 = vmatpush.msra.mxu1 %v1175_v61  ;;  %v1276_v61 = vld [vmem:[%s2693_s6 + $0xb8] sm:$0xff] }
 0x256   : > { %1335 = vmatpush.msra.mxu3 %v1278_v13  ;;  %1295 = vmatpush.msra.mxu2 %v1275_v39  ;;  %v1657_v13 = vld [vmem:[%s2701_s0 + $0xd8] sm:$0xff]  ;;  %v1655_v39 = vld [vmem:[%s2701_s0 + $0xc8] sm:$0xff] }
 0x257   : > { %1195 = vmatpush.msra.mxu1 %v1174_v4  ;;  %v1271_v4 = vld [vmem:[%s2693_s6 + $0x90] sm:$0xff] }
 0x258   : > { %1336 = vmatpush.msra.mxu3 %v1276_v61  ;;  %1296 = vmatpush.msra.mxu2 %v1273_v41  ;;  %v1653_v61 = vld [vmem:[%s2701_s0 + $0xb8] sm:$0xff]  ;;  %v1651_v41 = vld [vmem:[%s2701_s0 + $0xa8] sm:$0xff] }
 0x259   : > { %1196 = vmatpush.msra.mxu1 %v1173_v43  ;;  %v1269_v43 = vld [vmem:[%s2693_s6 + $0x80] sm:$0xff] }
 0x25a   : > { %1337 = vmatpush.msra.mxu3 %v1274_v42  ;;  %1297 = vmatpush.msra.mxu2 %v1271_v4 }
 0x25b   : > { %1197 = vmatpush.msra.mxu1 %v1172_v46  ;;  %v1268_v46 = vld [vmem:[%s2693_s6 + $0x78] sm:$0xff] }
 0x25c   : > { %1338 = vmatpush.msra.mxu3 %v1272_v5  ;;  %1298 = vmatpush.msra.mxu2 %v1269_v43  ;;  %v1649_v5 = vld [vmem:[%s2701_s0 + $0x98] sm:$0xff] }
 0x25d   : > { %1198 = vmatpush.msra.mxu1 %v1171_v48  ;;  %v2088_v48 = vld [vmem:[%s3442_s20 + $0x18] sm:$0xff]   ;;  %v1645_v43 = vld [vmem:[%s2701_s0 + $0x78] sm:$0xff] }
 0x25e   : > { %1339 = vmatpush.msra.mxu3 %v1270_v44  ;;  %1299 = vmatpush.msra.mxu2 %v1267_v45  ;;  %v2078_v55 = vunpack.c.h.bf16 %v2088_v48  ;;  %v1643_v44 = vld [vmem:[%s2701_s0 + $0x68] sm:$0xff] }
 0x25f   : > { %1199 = vmatpush.msra.mxu1 %v1170_v58  ;;  %v2077_v58 = vunpack.c.l.bf16 %v2088_v48  ;;  %v1637_v48 = vld [vmem:[%s2701_s0 + $0x38] sm:$0xff] }
 0x260   : > { %1340 = vmatpush.msra.mxu3 %v1268_v46  ;;  %1300 = vmatpush.msra.mxu2 %v1265_v20 }
 0x261   : > { %1200 = vmatpush.msra.mxu1 %v1169_v16  ;;  %v1259_v16 = vld [vmem:[%s2693_s6 + $0x30] sm:$0xff] }
 0x262   : > { %1341 = vmatpush.msra.mxu3 %v1266_v47  ;;  %1301 = vmatpush.msra.mxu2 %v1263_v18  ;;  %v1639_v47 = vld [vmem:[%s2701_s0 + $0x48] sm:$0xff] }
 0x263   : > { %1201 = vmatpush.msra.mxu1 %v1168_v6  ;;  %v1258_v6 = vld [vmem:[%s2693_s6 + $0x28] sm:$0xff] }
 0x264   : > { %1342 = vmatpush.msra.mxu3 %v1264_v40  ;;  %1302 = vmatpush.msra.mxu2 %v1261_v14  ;;  %v1635_v18 = vld [vmem:[%s2701_s0 + $0x28] sm:$0xff]  ;;  %v1633_v40 = vld [vmem:[%s2701_s0 + $0x18] sm:$0xff] }
 0x265   : > { %1202 = vmatpush.msra.mxu1 %v1167_v30  ;;  %v1256_v30 = vld [vmem:[%s2693_s6 + $0x18] sm:$0xff]  ;;  %s1235_s6 = sld [smem:[#allocation7 + %s2022_s23]] }
 0x266   : > { %1343 = vmatpush.msra.mxu3 %v1262_v15  ;;  %1303 = vmatpush.msra.mxu2 %v1259_v16  ;;  %v1631_v15 = vld [vmem:[%s2701_s0 + $0x8] sm:$0xff]  ;;  %v1725_v16 = vld [vmem:[%s2707_s2 + $0x78] sm:$0xff] }
 0x267   : > { %1203 = vmatpush.msra.mxu1 %v1166_v51  ;;  %v1660_v51 = vld [vmem:[%s2701_s0 + $0xf0] sm:$0xff]  ;;  %1746 = vmatpush.msrb.mxu0 %v1725_v16 }
 0x268   : > { %1344 = vmatpush.msra.mxu3 %v1260_v19  ;;  %1304 = vmatpush.msra.mxu2 %v1257_v17  ;;  %v1404_v19 = vld [vmem:[%s2699_s28 + $0x78] sm:$0xff] }
 0x269   : > { %1204 = vmatpush.msra.mxu1 %v1165_v33  ;;  %v1654_v33 = vld [vmem:[%s2701_s0 + $0xc0] sm:$0xff]  ;;  %v1420_v17 = vld [vmem:[%s2699_s28 + $0xf8] sm:$0xff] }
 0x26a   : > { %1345 = vmatpush.msra.mxu3 %v1258_v6  ;;  %1305 = vmatpush.msra.mxu2 %v1255_v8  ;;  %v1403_v6 = vld [vmem:[%s2699_s28 + $0x70] sm:$0xff]  ;;  %v1402_v8 = vld [vmem:[%s2699_s28 + $0x68] sm:$0xff] }
 0x26b   : > { %1205 = vmatpush.msra.mxu1 %v1164_v56  ;;  %v1648_v56 = vld [vmem:[%s2701_s0 + $0x90] sm:$0xff] }
 0x26c   : > { %1346 = vmatpush.msra.mxu3 %v1256_v30  ;;  %1306 = vmatpush.msra.mxu2 %v1253_v31  ;;  %v1418_v30 = vld [vmem:[%s2699_s28 + $0xe8] sm:$0xff] }
 0x26d   : > { %1206 = vmatpush.msra.mxu1 %v1163_v63  ;;  %v1644_v63 = vld [vmem:[%s2701_s0 + $0x70] sm:$0xff]  ;;  %v1723_v31 = vld [vmem:[%s2707_s2 + $0x68] sm:$0xff] }
 0x26e   : > { %1347 = vmatpush.msra.mxu3 %v1254_v32  ;;  %1466 = vmatpush.msrb.mxu2 %v1420_v17  ;;  %v1714_v17 = vld [vmem:[%s2707_s2 + $0x20] sm:$0xff] }
 0x26f   : > { %1207 = vmatpush.msra.mxu1 %v1162_v54  ;;  %v3213_v54 = vstv %s1235_s6 }
 0x270   : > { %1668 = vmatpush.msrb.mxu3 %v1660_v51  ;;  %v1238_v38 = vmul.f32 %v3213_v54, %v3016_v57  ;;  %v1241_v45 = vmul.f32 %v3213_v54, %v2890_v53  ;;  %v1242_v53 = vmul.f32 %v3213_v54, %v2888_v52  ;;  %v1419_v52 = vld [vmem:[%s2699_s28 + $0xf0] sm:$0xff]  ;;  %v1243_v32 = vmul.f32 %v3213_v54, %v2856_v29  ;;  %v1400_v29 = vld [vmem:[%s2699_s28 + $0x58] sm:$0xff] }
 0x271   : > { %1208 = vmatpush.msra.mxu1 %v1161_v22  ;;  %1467 = vmatpush.msrb.mxu2 %v1419_v52 }
 0x272   : > { %1209 = vmatmul.f32.vlgmr.msra.gmra.mxu1 %v2065_v3  ;;  %1669 = vmatpush.msrb.mxu3 %v1658_v0  ;;  %v1237_v3 = vmul.f32 %v3213_v54, %v3018_v28  ;;  %v1722_v0 = vld [vmem:[%s2707_s2 + $0x60] sm:$0xff] }
 0x273   : > { %1425 = vmatpush.msrb.mxu1 %v1404_v19  ;;  %1468 = vmatpush.msrb.mxu2 %v1418_v30  ;;  %v1736_v19 = vld [vmem:[%s2707_s2 + $0xd0] sm:$0xff] }
 0x274   : > { %1670 = vmatpush.msrb.mxu3 %v1656_v2 }
 0x275   : > { %1426 = vmatpush.msrb.mxu1 %v1403_v6  ;;  %v1735_v6 = vld [vmem:[%s2707_s2 + $0xc8] sm:$0xff] }
 0x276   : > { %1671 = vmatpush.msrb.mxu3 %v1654_v33  ;;  %v1401_v33 = vld [vmem:[%s2699_s28 + $0x60] sm:$0xff] }
 0x277   : > { %1427 = vmatpush.msrb.mxu1 %v1402_v8 }
 0x278   : > { %1672 = vmatpush.msrb.mxu3 %v1652_v60  ;;  %v1417_v60 = vld [vmem:[%s2699_s28 + $0xe0] sm:$0xff] }
 0x279   : > { %1428 = vmatpush.msrb.mxu1 %v1401_v33  ;;  %1469 = vmatpush.msrb.mxu2 %v1417_v60 }
 0x27a   : > { %1212 = vmatmul.f32.gmra.mxu1 %v2066_v1  ;;  %1673 = vmatpush.msrb.mxu3 %v1650_v36  ;;  %v1721_v36 = vld [vmem:[%s2707_s2 + $0x58] sm:$0xff] }
 0x27b   : > { %1429 = vmatpush.msrb.mxu1 %v1400_v29 }
 0x27c   : > { %1674 = vmatpush.msrb.mxu3 %v1648_v56  ;;  %v1416_v56 = vld [vmem:[%s2699_s28 + $0xd8] sm:$0xff] }
 0x27d   : > { %1470 = vmatpush.msrb.mxu2 %v1416_v56 }
 0x27e   : > { %1675 = vmatpush.msrb.mxu3 %v1646_v59  ;;  %v1720_v59 = vld [vmem:[%s2707_s2 + $0x50] sm:$0xff] }
 0x280   : > { %1676 = vmatpush.msrb.mxu3 %v1644_v63  ;;  %v1399_v63 = vld [vmem:[%s2699_s28 + $0x50] sm:$0xff] }
 0x281   : > { %1430 = vmatpush.msrb.mxu1 %v1399_v63  ;;  %v1732_v63 = vld [vmem:[%s2707_s2 + $0xb0] sm:$0xff] }
 0x282   : > { %1215 = vmatmul.f32.gmra.mxu1 %v2069_v34  ;;  %1677 = vmatpush.msrb.mxu3 %v1642_v21  ;;  %v1638_v34 = vld [vmem:[%s2701_s0 + $0x40] sm:$0xff]  ;;  %v1415_v21 = vld [vmem:[%s2699_s28 + $0xd0] sm:$0xff] }
 0x283   : > { %1471 = vmatpush.msrb.mxu2 %v1415_v21  ;;  %v1712_v21 = vld [vmem:[%s2707_s2 + $0x10] sm:$0xff] }
 0x284   : > { %1678 = vmatpush.msrb.mxu3 %v1640_v62  ;;  %v1414_v62 = vld [vmem:[%s2699_s28 + $0xc8] sm:$0xff] }
 0x285   : > { %1472 = vmatpush.msrb.mxu2 %v1414_v62 }
 0x286   : > { %1679 = vmatpush.msrb.mxu3 %v1638_v34 }
 0x28a   : > { %1218 = vmatmul.f32.gmra.mxu1 %v2070_v24  ;;  %v1636_v24 = vld [vmem:[%s2701_s0 + $0x30] sm:$0xff] }
 0x28b   : > { %1680 = vmatpush.msrb.mxu3 %v1636_v24 }
 0x28d   : > { %1681 = vmatpush.msrb.mxu3 %v1634_v35  ;;  %v1397_v35 = vld [vmem:[%s2699_s28 + $0x40] sm:$0xff] }
 0x28f   : > { %1682 = vmatpush.msrb.mxu3 %v1632_v25  ;;  %v3280_v25 = vld [vmem:[#allocation2] sm:$0xff] }
 0x291   : > { %1683 = vmatpush.msrb.mxu3 %v1630_v12  ;;  %v1394_v12 = vld [vmem:[%s2699_s28 + $0x28] sm:$0xff] }
 0x292   : > { %1221 = vmatmul.f32.gmra.mxu1 %v2073_v23  ;;  %v1239_v23 = vmul.f32 %v3213_v54, %v2995_v50  ;;  %v1240_v50 = vmul.f32 %v3213_v54, %v2953_v27  ;;  %v1641_v27 = vld [vmem:[%s2701_s0 + $0x58] sm:$0xff] }
 0x29a   : > { %1224 = vmatmul.f32.gmra.mxu1 %v2074_v37  ;;  %v1647_v37 = vld [vmem:[%s2701_s0 + $0x88] sm:$0xff] }
 0x2a2   : > { %1227 = vmatmul.f32.gmra.mxu1 %v2077_v58 }
 0x2aa   : > { %1230 = vmatmul.f32.gmra.mxu1 %v2078_v55  ;;  %v1724_v55 = vld [vmem:[%s2707_s2 + $0x70] sm:$0xff] }
 0x2ab   : > { %1747 = vmatpush.msrb.mxu0 %v1724_v55 }
 0x2ad   : > { %1748 = vmatpush.msrb.mxu0 %v1723_v31 }
 0x2af   : > { %1749 = vmatpush.msrb.mxu0 %v1722_v0  ;;  %v1713_v0 = vld [vmem:[%s2707_s2 + $0x18] sm:$0xff] }
 0x2b1   : > { %1750 = vmatpush.msrb.mxu0 %v1721_v36 }
 0x2b3   : > { %1751 = vmatpush.msrb.mxu0 %v1720_v59 }
 0x2ef   : > { %v1210_v22 = vpop.f32.mrf.mxu1 }
 0x2f0   : > { %v1245_v1 = vadd.f32 %v1237_v3, %v1210_v22  ;;  %v1719_v3 = vld [vmem:[%s2707_s2 + $0x48] sm:$0xff]  ;;  %v1244_v22 = vmul.f32 %v3213_v54, %v2816_v7  ;;  %v1396_v7 = vld [vmem:[%s2699_s28 + $0x38] sm:$0xff] }
 0x2f1   : > { %1752 = vmatpush.msrb.mxu0 %v1719_v3  ;;  %v1412_v54 = vld [vmem:[%s2699_s28 + $0xb8] sm:$0xff]  ;;  %v1731_v3 = vld [vmem:[%s2707_s2 + $0xa8] sm:$0xff] }
 0x2f2   : > { %1307 = vmatmul.f32.vlgmr.msra.gmra.mxu2 %v1245_v1  ;;  %1348 = vmatmul.f32.vlgmr.msra.gmra.mxu3 %v1245_v1  ;;  %v1398_v1 = vld [vmem:[%s2699_s28 + $0x48] sm:$0xff] }
 0x2f3   : > { %1688 = vmatpush.msra.mxu3 %v1661_v26  ;;  %1431 = vmatpush.msrb.mxu1 %v1398_v1  ;;  %v1410_v26 = vld [vmem:[%s2699_s28 + $0xa8] sm:$0xff] }
 0x2f5   : > { %1689 = vmatpush.msra.mxu3 %v1659_v10  ;;  %1432 = vmatpush.msrb.mxu1 %v1397_v35  ;;  %v1629_v10 = vadd.f32 %v3072_v49, %v3280_v25  ;;  %v1407_v49 = vld [vmem:[%s2699_s28 + $0x90] sm:$0xff] }
 0x2f7   : > { %v1213_v28 = vpop.f32.mrf.mxu1  ;;  %1690 = vmatpush.msra.mxu3 %v1657_v13  ;;  %1433 = vmatpush.msrb.mxu1 %v1396_v7  ;;  %v1408_v13 = vld [vmem:[%s2699_s28 + $0x98] sm:$0xff]  ;;  %v1711_v7 = vld [vmem:[%s2707_s2 + $0x8] sm:$0xff] }
 0x2f8   : > { %v1246_v11 = vadd.f32 %v1238_v38, %v1213_v28  ;;  %v1413_v38 = vld [vmem:[%s2699_s28 + $0xc0] sm:$0xff]  ;;  %v1395_v28 = vld [vmem:[%s2699_s28 + $0x30] sm:$0xff] }
 0x2f9   : > { %1691 = vmatpush.msra.mxu3 %v1655_v39  ;;  %1473 = vmatpush.msrb.mxu2 %v1413_v38  ;;  %v1391_v39 = vld [vmem:[%s2699_s28 + $0x10] sm:$0xff]  ;;  %v1730_v38 = vld [vmem:[%s2707_s2 + $0xa0] sm:$0xff] }
 0x2fa   : > { %1310 = vmatmul.f32.gmra.mxu2 %v1246_v11  ;;  %1351 = vmatmul.f32.gmra.mxu3 %v1246_v11  ;;  %v1411_v11 = vld [vmem:[%s2699_s28 + $0xb0] sm:$0xff] }
 0x2fb   : > { %1692 = vmatpush.msra.mxu3 %v1653_v61  ;;  %1474 = vmatpush.msrb.mxu2 %v1412_v54  ;;  %v1390_v61 = vld [vmem:[%s2699_s28 + $0x8] sm:$0xff]  ;;  %v1729_v54 = vld [vmem:[%s2707_s2 + $0x98] sm:$0xff] }
 0x2fc   : > { %1434 = vmatpush.msrb.mxu1 %v1395_v28 }
 0x2fd   : > { %1693 = vmatpush.msra.mxu3 %v1651_v41  ;;  %1475 = vmatpush.msrb.mxu2 %v1411_v11  ;;  %v1406_v41 = vld [vmem:[%s2699_s28 + $0x88] sm:$0xff] }
 0x2fe   : > { %1435 = vmatpush.msrb.mxu1 %v1394_v12 }
 0x2ff   : > { %v1216_v57 = vpop.f32.mrf.mxu1  ;;  %1694 = vmatpush.msra.mxu3 %v1649_v5  ;;  %1476 = vmatpush.msrb.mxu2 %v1410_v26  ;;  %v1717_v5 = vld [vmem:[%s2707_s2 + $0x38] sm:$0xff] }
 0x300   : > { %v1247_v9 = vadd.f32 %v1239_v23, %v1216_v57  ;;  %v1393_v23 = vld [vmem:[%s2699_s28 + $0x20] sm:$0xff] }
 0x301   : > { %1695 = vmatpush.msra.mxu3 %v1647_v37  ;;  %v1409_v57 = vld [vmem:[%s2699_s28 + $0xa0] sm:$0xff]  ;;  %1436 = vmatpush.msrb.mxu1 %v1393_v23  ;;  %v1741_v37 = vld [vmem:[%s2707_s2 + $0xf8] sm:$0xff] }
 0x302   : > { %1313 = vmatmul.f32.gmra.mxu2 %v1247_v9  ;;  %1354 = vmatmul.f32.gmra.mxu3 %v1247_v9  ;;  %v1392_v9 = vld [vmem:[%s2699_s28 + $0x18] sm:$0xff] }
 0x303   : > { %1696 = vmatpush.msra.mxu3 %v1645_v43  ;;  %1477 = vmatpush.msrb.mxu2 %v1409_v57  ;;  %v1740_v43 = vld [vmem:[%s2707_s2 + $0xf0] sm:$0xff] }
 0x304   : > { %1437 = vmatpush.msrb.mxu1 %v1392_v9  ;;  %v1728_v57 = vld [vmem:[%s2707_s2 + $0x90] sm:$0xff]  ;;  %v1710_v9 = vld [vmem:[%s2707_s2] sm:$0xff] }
 0x305   : > { %1697 = vmatpush.msra.mxu3 %v1643_v44  ;;  %1478 = vmatpush.msrb.mxu2 %v1408_v13  ;;  %v1716_v44 = vld [vmem:[%s2707_s2 + $0x30] sm:$0xff]  ;;  %v1727_v13 = vld [vmem:[%s2707_s2 + $0x88] sm:$0xff] }
 0x306   : > { %1438 = vmatpush.msrb.mxu1 %v1391_v39 }
 0x307   : > { %v1219_v42 = vpop.f32.mrf.mxu1  ;;  %1698 = vmatpush.msra.mxu3 %v1641_v27  ;;  %1479 = vmatpush.msrb.mxu2 %v1407_v49  ;;  %v1285_v27 = vld [vmem:[%s2723_s26] sm:$0x3] }
 0x308   : > { %v1248_v4 = vadd.f32 %v1240_v50, %v1219_v42  ;;  %v1718_v50 = vld [vmem:[%s2707_s2 + $0x40] sm:$0xff]  ;;  %1439 = vmatpush.msrb.mxu1 %v1390_v61 }
 0x309   : > { %1699 = vmatpush.msra.mxu3 %v1639_v47  ;;  %1753 = vmatpush.msrb.mxu0 %v1718_v50  ;;  %v1389_v42 = vld [vmem:[%s2699_s28] sm:$0xff]  ;;  %v3305_v47 = vperm.slane %v1285_v27, 0 }
 0x30a   : > { %1316 = vmatmul.f32.gmra.mxu2 %v1248_v4  ;;  %1357 = vmatmul.f32.gmra.mxu3 %v1248_v4  ;;  %v1405_v4 = vld [vmem:[%s2699_s28 + $0x80] sm:$0xff] }
 0x30b   : > { %1700 = vmatpush.msra.mxu3 %v1637_v48  ;;  %1480 = vmatpush.msrb.mxu2 %v1406_v41  ;;  %v3307_v48 = vperm.slane %v1285_v27, 1 }
 0x30c   : > { %1440 = vmatpush.msrb.mxu1 %v1389_v42  ;;  %1754 = vmatpush.msrb.mxu0 %v1717_v5 }
 0x30d   : > { %1701 = vmatpush.msra.mxu3 %v1635_v18  ;;  %1481 = vmatpush.msrb.mxu2 %v1405_v4  ;;  %v1737_v18 = vld [vmem:[%s2707_s2 + $0xd8] sm:$0xff]  ;;  %v1726_v4 = vld [vmem:[%s2707_s2 + $0x80] sm:$0xff] }
 0x30e   : > { %1766 = vmatpush.msra.mxu1 %v1741_v37  ;;  %1755 = vmatpush.msrb.mxu0 %v1716_v44 }
 0x30f   : > { %v1222_v46 = vpop.f32.mrf.mxu1  ;;  %1702 = vmatpush.msra.mxu3 %v1633_v40 }
 0x310   : > { %v1249_v20 = vadd.f32 %v1241_v45, %v1222_v46  ;;  %1767 = vmatpush.msra.mxu1 %v1740_v43  ;;  %v1739_v45 = vld [vmem:[%s2707_s2 + $0xe8] sm:$0xff]  ;;  %v1738_v46 = vld [vmem:[%s2707_s2 + $0xe0] sm:$0xff] }
 0x311   : > { %1703 = vmatpush.msra.mxu3 %v1631_v15 }
 0x312   : > { %1319 = vmatmul.f32.gmra.mxu2 %v1249_v20  ;;  %1360 = vmatmul.f32.gmra.mxu3 %v1249_v20  ;;  %v1715_v20 = vld [vmem:[%s2707_s2 + $0x28] sm:$0xff] }
 0x313   : > { %1768 = vmatpush.msra.mxu1 %v1739_v45  ;;  %1756 = vmatpush.msrb.mxu0 %v1715_v20 }
 0x315   : > { %1769 = vmatpush.msra.mxu1 %v1738_v46  ;;  %1757 = vmatpush.msrb.mxu0 %v1714_v17 }
 0x317   : > { %v1225_v58 = vpop.f32.mrf.mxu1  ;;  %1770 = vmatpush.msra.mxu1 %v1737_v18  ;;  %1758 = vmatpush.msrb.mxu0 %v1713_v0 }
 0x318   : > { %v1250_v14 = vadd.f32 %v1242_v53, %v1225_v58 }
 0x319   : > { %1771 = vmatpush.msra.mxu1 %v1736_v19  ;;  %1759 = vmatpush.msrb.mxu0 %v1712_v21 }
 0x31a   : > { %1322 = vmatmul.f32.gmra.mxu2 %v1250_v14  ;;  %1363 = vmatmul.f32.gmra.mxu3 %v1250_v14 }
 0x31b   : > { %1772 = vmatpush.msra.mxu1 %v1735_v6  ;;  %1760 = vmatpush.msrb.mxu0 %v1711_v7 }
 0x31d   : > { %1761 = vmatpush.msrb.mxu0 %v1710_v9 }
 0x31f   : > { %v1228_v51 = vpop.f32.mrf.mxu1 }
 0x320   : > { %v1251_v2 = vadd.f32 %v1243_v32, %v1228_v51  ;;  %v1734_v51 = vld [vmem:[%s2707_s2 + $0xc0] sm:$0xff] }
 0x321   : > { %1773 = vmatpush.msra.mxu1 %v1734_v51 }
 0x322   : > { %1325 = vmatmul.f32.gmra.mxu2 %v1251_v2  ;;  %1366 = vmatmul.f32.gmra.mxu3 %v1251_v2  ;;  %v1733_v2 = vld [vmem:[%s2707_s2 + $0xb8] sm:$0xff]  ;;  %s1516_s2 = scalar_select %p675_p5, 1, 0 }
 0x323   : > { %1774 = vmatpush.msra.mxu1 %v1733_v2 }
 0x325   : > { %1775 = vmatpush.msra.mxu1 %v1732_v63 }
 0x327   : > { %v1231_v34 = vpop.f32.mrf.mxu1  ;;  %1776 = vmatpush.msra.mxu1 %v1731_v3 }
 0x328   : > { %v1252_v24 = vadd.f32 %v1244_v22, %v1231_v34 }
 0x329   : > { %1777 = vmatpush.msra.mxu1 %v1730_v38 }
 0x32a   : > { %1328 = vmatmul.f32.gmra.mxu2 %v1252_v24  ;;  %1369 = vmatmul.f32.gmra.mxu3 %v1252_v24 }
 0x32b   : > { %1778 = vmatpush.msra.mxu1 %v1729_v54 }
 0x32d   : > { %1779 = vmatpush.msra.mxu1 %v1728_v57 }
 0x32f   : > { %1780 = vmatpush.msra.mxu1 %v1727_v13 }
 0x331   : > { %1781 = vmatpush.msra.mxu1 %v1726_v4 }
 0x332   : > { %1684 = vmatmul.f32.vlgmr.msrb.gmra.mxu3 %v1629_v10 }
 0x33a   : > { %1704 = vmatmul.f32.vlgmr.msra.gmra.mxu3 %v1629_v10 }
 0x375   : > { %v1308_v53 = vpop.f32.mrf.mxu2  ;;  %v1349_v40 = vpop.f32.mrf.mxu3 }
 0x376   : > { %v1309_v58 = vadd.f32 %v1308_v53, %v3305_v47  ;;  %v1350_v14 = vadd.f32 %v1349_v40, %v3307_v48  ;;  %v1662_v40 = vld [vmem:[%s2728_s22] sm:$0x3] }
 0x377   : > { %v1665_v6 = vperm.slane %v1662_v40, 1 }
 0x378   : > { %v1373_v15 = vmax.f32 %v1309_v58, 0.0  ;;  %v1374_v16 = vmax.f32 %v1350_v14, 0.0 }
 0x37a   : > { %1441 = vmatmul.f32.vlgmr.msrb.gmra.mxu1 %v1373_v15  ;;  %1482 = vmatmul.f32.vlgmr.msrb.gmra.mxu2 %v1374_v16  ;;  %v1664_v15 = vperm.slane %v1662_v40, 0 }
 0x37d   : > { %v1311_v52 = vpop.f32.mrf.mxu2  ;;  %v1352_v55 = vpop.f32.mrf.mxu3 }
 0x37e   : > { %v1312_v8 = vadd.f32 %v1311_v52, %v3305_v47  ;;  %v1353_v30 = vadd.f32 %v1352_v55, %v3307_v48 }
 0x380   : > { %v1375_v31 = vmax.f32 %v1312_v8, 0.0  ;;  %v1376_v32 = vmax.f32 %v1353_v30, 0.0 }
 0x382   : > { %1444 = vmatmul.f32.gmra.mxu1 %v1375_v31  ;;  %1485 = vmatmul.f32.gmra.mxu2 %v1376_v32  ;;  %v1517_v31 = vstv %s1516_s2 }
 0x383   : > { %vm3350_vm5 = vcmp.eq.s32.totalorder %v1517_v31, 1 }
 0x385   : > { %v1314_v33 = vpop.f32.mrf.mxu2  ;;  %v1355_v60 = vpop.f32.mrf.mxu3 }
 0x386   : > { %v1315_v36 = vadd.f32 %v1314_v33, %v3305_v47  ;;  %v1356_v29 = vadd.f32 %v1355_v60, %v3307_v48 }
 0x388   : > { %v1377_v56 = vmax.f32 %v1315_v36, 0.0  ;;  %v1378_v59 = vmax.f32 %v1356_v29, 0.0 }
 0x38a   : > { %1447 = vmatmul.f32.gmra.mxu1 %v1377_v56  ;;  %1488 = vmatmul.f32.gmra.mxu2 %v1378_v59 }
 0x38d   : > { %v1317_v22 = vpop.f32.mrf.mxu2  ;;  %v1358_v1 = vpop.f32.mrf.mxu3 }
 0x38e   : > { %v1318_v62 = vadd.f32 %v1317_v22, %v3305_v47  ;;  %v1359_v34 = vadd.f32 %v1358_v1, %v3307_v48 }
 0x390   : > { %v1379_v24 = vmax.f32 %v1318_v62, 0.0  ;;  %v1380_v35 = vmax.f32 %v1359_v34, 0.0 }
 0x392   : > { %1450 = vmatmul.f32.gmra.mxu1 %v1379_v24  ;;  %1491 = vmatmul.f32.gmra.mxu2 %v1380_v35 }
 0x395   : > { %v1320_v28 = vpop.f32.mrf.mxu2  ;;  %v1361_v11 = vpop.f32.mrf.mxu3 }
 0x396   : > { %v1321_v12 = vadd.f32 %v1320_v28, %v3305_v47  ;;  %v1362_v26 = vadd.f32 %v1361_v11, %v3307_v48 }
 0x398   : > { %v1381_v10 = vmax.f32 %v1321_v12, 0.0  ;;  %v1382_v23 = vmax.f32 %v1362_v26, 0.0 }
 0x39a   : > { %1453 = vmatmul.f32.gmra.mxu1 %v1381_v10  ;;  %1494 = vmatmul.f32.gmra.mxu2 %v1382_v23 }
 0x39d   : > { %v1323_v39 = vpop.f32.mrf.mxu2  ;;  %v1364_v49 = vpop.f32.mrf.mxu3 }
 0x39e   : > { %v1324_v61 = vadd.f32 %v1323_v39, %v3305_v47  ;;  %v1365_v41 = vadd.f32 %v1364_v49, %v3307_v48 }
 0x3a0   : > { %v1383_v50 = vmax.f32 %v1324_v61, 0.0  ;;  %v1384_v42 = vmax.f32 %v1365_v41, 0.0 }
 0x3a2   : > { %1456 = vmatmul.f32.gmra.mxu1 %v1383_v50  ;;  %1497 = vmatmul.f32.gmra.mxu2 %v1384_v42 }
 0x3a5   : > { %v1326_v5 = vpop.f32.mrf.mxu2  ;;  %v1367_v37 = vpop.f32.mrf.mxu3 }
 0x3a6   : > { %v1327_v43 = vadd.f32 %v1326_v5, %v3305_v47  ;;  %v1368_v44 = vadd.f32 %v1367_v37, %v3307_v48 }
 0x3a8   : > { %v1385_v45 = vmax.f32 %v1327_v43, 0.0  ;;  %v1386_v27 = vmax.f32 %v1368_v44, 0.0 }
 0x3aa   : > { %1459 = vmatmul.f32.gmra.mxu1 %v1385_v45  ;;  %1500 = vmatmul.f32.gmra.mxu2 %v1386_v27 }
 0x3ad   : > { %v1329_v46 = vpop.f32.mrf.mxu2  ;;  %v1370_v20 = vpop.f32.mrf.mxu3 }
 0x3ae   : > { %v1330_v18 = vadd.f32 %v1329_v46, %v3305_v47  ;;  %v1371_v53 = vadd.f32 %v1370_v20, %v3307_v48  ;;  %v2186_v48 = vld [vmem:[%s681_s16] ss:$0 sm:$0xff]  ;;  %s2441_s16 = smov [#allocation14]  }
 0x3af   : > { %s1794_s26 = sshll.u32 %s2441_s16, 4  ;;  %s1795_s26 = int_to_ptr.vmem [resolvable:$true] %s1794_s26 }
 0x3b0   : > { %v1387_v58 = vmax.f32 %v1330_v18, 0.0  ;;  %v1388_v14 = vmax.f32 %v1371_v53, 0.0  ;;  %v2187_v53 = vld [vmem:[%s688_s24] ss:$0 sm:$0xff] }
 0x3b2   : > { %1462 = vmatmul.f32.gmra.mxu1 %v1387_v58  ;;  %1503 = vmatmul.f32.gmra.mxu2 %v1388_v14 }
 0x3b5   : > { %v1685_v16 = vpop.f32.mrf.mxu3 }
 0x3b6   : > { %v1686_v19 = vadd.f32 %v1685_v16, %v1664_v15 }
 0x3b8   : > { %v1708_v17 = vmax.f32 %v1686_v19, 0.0 }
 0x3ba   : > { %1762 = vmatmul.f32.vlgmr.msrb.gmra.mxu0 %v1708_v17 }
 0x3bd   : > { %v1705_v52 = vpop.f32.mrf.mxu3 }
 0x3be   : > { %v1706_v55 = vadd.f32 %v1705_v52, %v1665_v6 }
 0x3c0   : > { %v1709_v8 = vmax.f32 %v1706_v55, 0.0 }
 0x3c2   : > { %1782 = vmatmul.f32.vlgmr.msra.gmra.mxu1 %v1709_v8 }
 0x3f7   : > { %v1442_v47 = vpop.f32.mrf.mxu1 }
 0x3f8   : > { %v1443_v30 = vadd.f32 %v2186_v48, %v1442_v47 }
 0x3fd   : > { %v1483_v32 = vpop.f32.mrf.mxu2 }
 0x3fe   : > { %v1484_v51 = vadd.f32 %v1483_v32, %v1443_v30 }
 0x3ff   : > { %v1445_v2 = vpop.f32.mrf.mxu1 }
 0x400   : > { %v1508_v33 = vmax.f32 %v1484_v51, 0.0  ;;  %v1446_v36 = vadd.f32 %v2186_v48, %v1445_v2 }
 0x402   : > { %v1519_v60 = vsel %vm3350_vm5, %v1508_v33, %v1484_v51 }
 0x403   : > { %1527 = vst [vmem:[#allocation14] sm:$0xff] %v1519_v60 }
 0x405   : > { %v1486_v29 = vpop.f32.mrf.mxu2 }
 0x406   : > { %v1487_v56 = vadd.f32 %v1486_v29, %v1446_v36 }
 0x407   : > { %v1448_v59 = vpop.f32.mrf.mxu1 }
 0x408   : > { %v1509_v63 = vmax.f32 %v1487_v56, 0.0  ;;  %v1449_v3 = vadd.f32 %v2186_v48, %v1448_v59 }
 0x40a   : > { %v1520_v21 = vsel %vm3350_vm5, %v1509_v63, %v1487_v56 }
 0x40b   : > { %1528 = vst [vmem:[#allocation14 + $0x8] sm:$0xff] %v1520_v21 }
 0x40d   : > { %v1489_v22 = vpop.f32.mrf.mxu2 }
 0x40e   : > { %v1490_v1 = vadd.f32 %v1489_v22, %v1449_v3 }
 0x40f   : > { %v1451_v62 = vpop.f32.mrf.mxu1 }
 0x410   : > { %v1510_v34 = vmax.f32 %v1490_v1, 0.0  ;;  %v1452_v35 = vadd.f32 %v2186_v48, %v1451_v62 }
 0x412   : > { %v1521_v24 = vsel %vm3350_vm5, %v1510_v34, %v1490_v1 }
 0x413   : > { %1529 = vst [vmem:[#allocation14 + $0x10] sm:$0xff] %v1521_v24 }
 0x415   : > { %v1492_v38 = vpop.f32.mrf.mxu2 }
 0x416   : > { %v1493_v7 = vadd.f32 %v1492_v38, %v1452_v35 }
 0x417   : > { %v1454_v54 = vpop.f32.mrf.mxu1 }
 0x418   : > { %v1511_v28 = vmax.f32 %v1493_v7, 0.0  ;;  %v1455_v12 = vadd.f32 %v2186_v48, %v1454_v54 }
 0x41a   : > { %v1522_v11 = vsel %vm3350_vm5, %v1511_v28, %v1493_v7 }
 0x41b   : > { %1530 = vst [vmem:[#allocation14 + $0x18] sm:$0xff] %v1522_v11 }
 0x41d   : > { %v1495_v26 = vpop.f32.mrf.mxu2 }
 0x41e   : > { %v1496_v10 = vadd.f32 %v1495_v26, %v1455_v12 }
 0x41f   : > { %v1457_v23 = vpop.f32.mrf.mxu1 }
 0x420   : > { %v1512_v57 = vmax.f32 %v1496_v10, 0.0  ;;  %v1458_v13 = vadd.f32 %v2186_v48, %v1457_v23 }
 0x422   : > { %v1523_v9 = vsel %vm3350_vm5, %v1512_v57, %v1496_v10 }
 0x423   : > { %1531 = vst [vmem:[#allocation14 + $0x20] sm:$0xff] %v1523_v9 }
 0x425   : > { %v1498_v39 = vpop.f32.mrf.mxu2 }
 0x426   : > { %v1499_v49 = vadd.f32 %v1498_v39, %v1458_v13 }
 0x427   : > { %v1460_v61 = vpop.f32.mrf.mxu1 }
 0x428   : > { %v1513_v41 = vmax.f32 %v1499_v49, 0.0  ;;  %v1461_v42 = vadd.f32 %v2186_v48, %v1460_v61 }
 0x42a   : > { %v1524_v50 = vsel %vm3350_vm5, %v1513_v41, %v1499_v49 }
 0x42b   : > { %1532 = vst [vmem:[#allocation14 + $0x28] sm:$0xff] %v1524_v50 }
 0x42d   : > { %v1501_v4 = vpop.f32.mrf.mxu2 }
 0x42e   : > { %v1502_v5 = vadd.f32 %v1501_v4, %v1461_v42 }
 0x42f   : > { %v1463_v43 = vpop.f32.mrf.mxu1 }
 0x430   : > { %v1514_v37 = vmax.f32 %v1502_v5, 0.0  ;;  %v1464_v45 = vadd.f32 %v2186_v48, %v1463_v43 }
 0x432   : > { %v1525_v44 = vsel %vm3350_vm5, %v1514_v37, %v1502_v5 }
 0x433   : > { %1533 = vst [vmem:[#allocation14 + $0x30] sm:$0xff] %v1525_v44 }
 0x435   : > { %v1504_v27 = vpop.f32.mrf.mxu2 }
 0x436   : > { %v1505_v46 = vadd.f32 %v1504_v27, %v1464_v45 }
 0x437   : > { %v1763_v40 = vpop.f32.mrf.mxu0 }
 0x438   : > { %v1515_v20 = vmax.f32 %v1505_v46, 0.0  ;;  %v1764_v58 = vadd.f32 %v2187_v53, %v1763_v40 }
 0x43a   : > { %v1526_v18 = vsel %vm3350_vm5, %v1515_v20, %v1505_v46 }
 0x43b   : > { %1534 = vst [vmem:[#allocation14 + $0x38] sm:$0xff] %v1526_v18 }
 0x43c   : > { %2106 = dma.vmem_to_hbm [thread:$0]  (%p2134_p7), %s1795_s26, 1024, %s1797_s15, [#allocation5], %s2442_s14, %s2442_s14, %s2443_s10  }
 0x43f   : > { %v1783_v14 = vpop.f32.mrf.mxu1 }
 0x440   : > { %v1784_v15 = vadd.f32 %v1783_v14, %v1764_v58 }
 0x442   : > { %v1786_v16 = vmax.f32 %v1784_v15, 0.0 }
 0x444   : > { %v1787_v19 = vsel %vm3350_vm5, %v1786_v16, %v3280_v25 }
 0x445   : > { %1788 = vst [vmem:[#allocation2] sm:$0xff] %v1787_v19 }
 0x446   : > { %2414 = dma.done.wait (%p2134_p7), [#allocation5], 1024  }
 0x447   : > { %2416 = vsyncadd (%p2134_p7), [#allocation5], 4294966272 }
 0x448 PF: > { %s3446_s16 = sld [smem:[#allocation21_spill]]  ;;  %s3449_s29 = smov %s2423_s30 }
 0x449   : > { %s3447_s21 = sld [smem:[#allocation20_spill]] }
 0x44a   : > { %s3448_s15 = sld [smem:[#allocation22_spill]] }
 0x44e   : > { %p30_p10 = scmp.ge.s32.totalorder %s3446_s16, 4  }
 0x44f   : > { %s3450_s30 = smov %s3447_s21 }
 0x450   :  { %32 = sbr.rel (!%p30_p10) target bundleno = 16 (0x10), region = 174 }
 0x455   :  { %1813 = vsyncpa [#allocation4], 1 }
 0x456   :  { %1815 = vsyncpa [#allocation4 + $0x1], 1 }
 0x457   :  { %1816 = vsyncpa [#allocation9], 1 }
 0x458   :  { %1818 = vsyncpa [#allocation9 + $0x1], 1 }
 0x459   :  { %1819 = vsyncpa [#allocation12], 1 }
 0x45a   :  { %1821 = vsyncpa [#allocation12 + $0x1], 1 }
 0x45b   :  { %1822 = vsyncpa [#allocation5], 1 }
 0x45c   :  { %1824 = vsyncpa [#allocation5 + $0x1], 1 }
 0x45d   :  { %1825 = vsyncpa [#allocation6], 1 }
 0x45e   :  { %1827 = vsyncpa [#allocation6 + $0x1], 1 }

</bundles_post_ra>
